<compile_context>
chip_gen: v7x
topology: tpu7x:2x2x1
jax: 0.10.0
libtpu: 0.0.40
codegen_flags: <defaults>
</compile_context>

<pallas_src>
import math

import jax
import jax.numpy as jnp
import numpy as np
from jax import lax
from jax.experimental import pallas as pl
from jax.experimental.pallas import tpu as pltpu


def _round_up(x, m):
    return (x + m - 1) // m * m


def _make_kernel(Bp, T, Hp):
    """Bp: batch padded to the 8-sublane tile; Hp: hidden padded to 128 lanes."""

    def kernel(x_ref, wih_ref, whh_ref, gib_ref, bhn_ref,
               awh_ref, awe_ref, ab_ref, v_ref,
               fcw_ref, fcb_ref, scale_ref, off_ref,
               out_ref, hs_ref):
        f32 = jnp.float32
        bf16 = jnp.bfloat16

        # ---- Fused, hoisted input projection: ONE MXU push for all T steps / 3 gates.
        # (b_ih + b_hh folded for r/z; only b_ih for n -- b_hh_n is gated by r.)
        gi = jnp.dot(x_ref[...], wih_ref[...], preferred_element_type=f32) + gib_ref[...]
        gi_r = gi[:, 0:Hp]              # whole-vreg-aligned slices (per-gate 128-lane blocks)
        gi_z = gi[:, Hp:2 * Hp]
        gi_n = gi[:, 2 * Hp:3 * Hp]

        whh = whh_ref[...]              # (Hp, 3*Hp) bf16, gates in separate lane blocks
        b_hn = bhn_ref[...]             # (1, Hp) f32 -- stays in-loop (gated by r)

        # ---- GRU recurrence: ONE MXU push per step; only `h` is carried in vregs;
        # h_t is spilled to the VMEM slab (off the h->h critical path).
        h = jnp.zeros((Bp, Hp), f32)
        for t in range(T):
            lo = t * Bp                 # Bp-aligned -> whole-vreg row slices
            gh = jnp.dot(h.astype(bf16), whh, preferred_element_type=f32)   # (Bp, 3*Hp)
            r = jax.nn.sigmoid(gi_r[lo:lo + Bp, :] + gh[:, 0:Hp])
            z = jax.nn.sigmoid(gi_z[lo:lo + Bp, :] + gh[:, Hp:2 * Hp])
            n = jnp.tanh(gi_n[lo:lo + Bp, :] + r * (gh[:, 2 * Hp:3 * Hp] + b_hn))
            h = (1.0 - z) * n + z * h
            hs_ref[lo:lo + Bp, :] = h

        # ---- Attention: TWO batched MXU matmuls (energy, score) instead of 2*T tiny ones.
        # energy_t = tanh(h_T @ Wh + h_t @ We + b);  score_t = energy_t @ v
        hs_all = hs_ref[...]                                               # (T*Bp, Hp) f32
        h_proj = (jnp.dot(h.astype(bf16), awh_ref[...], preferred_element_type=f32)
                  + ab_ref[...])                                           # (Bp, Hp)
        h_rep = jnp.concatenate([h_proj] * T, axis=0)                      # (T*Bp, Hp)
        energy = jnp.tanh(jnp.dot(hs_all.astype(bf16), awe_ref[...],
                                  preferred_element_type=f32) + h_rep)
        scores = jnp.dot(energy.astype(bf16), v_ref[...],
                         preferred_element_type=f32)                       # (T*Bp, 1)

        # Softmax over time + weighted sum (small vreg loop, off the serial path).
        m = scores[0:Bp, :]
        for t in range(1, T):
            m = jnp.maximum(m, scores[t * Bp:(t + 1) * Bp, :])
        num = jnp.zeros((Bp, Hp), f32)
        den = jnp.zeros((Bp, 1), f32)
        for t in range(T):
            e_t = jnp.exp(scores[t * Bp:(t + 1) * Bp, :] - m)              # (Bp, 1)
            den = den + e_t
            num = num + e_t * hs_all[t * Bp:(t + 1) * Bp, :]
        context = num / den                                                # (Bp, Hp)

        # ---- FC head; per-slice sigmoid scaling via precomputed scale/offset rows.
        fc = (jnp.dot(context.astype(bf16), fcw_ref[...], preferred_element_type=f32)
              + fcb_ref[...])                                              # (Bp, 3L)
        out_ref[...] = jax.nn.sigmoid(fc) * scale_ref[...] + off_ref[...]

    return kernel


def prepare_params(params, *, hidden, look_ahead):
    """One-time weight preprocessing (hoisted out of the per-call path):
    transposes, per-gate splits into 128-lane blocks, bias folds, zero-padding of the
    hidden dim to 128 lanes, bf16 casts, and the output scale/offset rows."""
    wih, whh, bih, bhh, attn_w, attn_b, v, fc_w, fc_b = params
    H = hidden
    Hp = _round_up(H, 128)
    L = look_ahead
    outw = fc_w.shape[0]                      # outputDim * lookAhead
    f32, bf16 = jnp.float32, jnp.bfloat16

    def pad2(a, rows, cols):
        return jnp.pad(a, ((0, rows - a.shape[0]), (0, cols - a.shape[1])))

    def pad_row(b):
        return jnp.pad(b.reshape(1, -1), ((0, 0), (0, Hp - H)))

    D = wih.shape[1]
    # Gate weights in separate 128-lane blocks (padded columns are zero so the padded
    # hidden lanes stay exactly zero through the recurrence / attention).
    wih_cat = jnp.concatenate(
        [pad2(wih[g * H:(g + 1) * H, :].T, D, Hp) for g in range(3)], axis=1).astype(bf16)
    whh_cat = jnp.concatenate(
        [pad2(whh[g * H:(g + 1) * H, :].T, Hp, Hp) for g in range(3)], axis=1).astype(bf16)

    # Folded gate biases: (b_ih + b_hh) for r/z (pure pre-activation), b_ih only for n.
    gi_bias = jnp.concatenate(
        [pad_row(bih[:H] + bhh[:H]),
         pad_row(bih[H:2 * H] + bhh[H:2 * H]),
         pad_row(bih[2 * H:])], axis=1).astype(f32)                        # (1, 3*Hp)
    b_hn = pad_row(bhh[2 * H:]).astype(f32)                                # (1, Hp)

    attn_wh = pad2(attn_w[:, :H].T, Hp, Hp).astype(bf16)
    attn_we = pad2(attn_w[:, H:].T, Hp, Hp).astype(bf16)
    attn_b2 = pad_row(attn_b).astype(f32)
    v_col = jnp.pad(v.reshape(-1, 1), ((0, Hp - H), (0, 0))).astype(bf16)  # (Hp, 1)

    fc_w_p = jnp.pad(fc_w.T, ((0, Hp - H), (0, 0))).astype(bf16)           # (Hp, outw)
    fc_b2 = fc_b.reshape(1, outw).astype(f32)

    # Output head scaling:  [0:L] -> 2*sig-1,  [L:2L] -> 20*sig-10,  [2L:3L] -> 10*sig.
    col = jnp.arange(outw)[None, :]
    scale = jnp.where(col < L, 2.0, jnp.where(col < 2 * L, 20.0, 10.0)).astype(f32)
    offset = jnp.where(col < L, -1.0, jnp.where(col < 2 * L, -10.0, 0.0)).astype(f32)

    return (wih_cat, whh_cat, gi_bias, b_hn, attn_wh, attn_we, attn_b2, v_col,
            fc_w_p, fc_b2, scale, offset)


@jax.jit
def gru_model_s_forward(x, prepped):
    """x: (B, T, D) float32.  Returns (B, outputDim*lookAhead) float32."""
    (wih_cat, whh_cat, gi_bias, b_hn, attn_wh, attn_we, attn_b2, v_col,
     fc_w_p, fc_b2, scale, offset) = prepped
    B, T, D = x.shape
    Bp = _round_up(B, 8)                  # f32 sublane tile: in-loop slices are whole vregs
    Hp = whh_cat.shape[0]
    outw = fc_w_p.shape[1]

    # Glue: time-major, batch padded with zero rows; row = t*Bp + b.
    x_tm = jnp.pad(jnp.transpose(x, (1, 0, 2)).astype(jnp.float32),
                   ((0, 0), (0, Bp - B), (0, 0)))
    x_flat = x_tm.reshape(T * Bp, D).astype(jnp.bfloat16)

    kernel = _make_kernel(Bp, T, Hp)
    vmem = pl.BlockSpec(memory_space=pltpu.MemorySpace.VMEM)

    flops = int(2 * T * Bp * D * 3 * Hp          # fused hoisted input projection
                + 2 * T * Bp * Hp * 3 * Hp       # recurrent matmuls
                + 12 * T * Bp * Hp               # gate elementwise
                + 2 * Bp * Hp * Hp               # h_proj
                + 2 * T * Bp * Hp * Hp           # batched energy matmul
                + 2 * T * Bp * Hp                # batched score contraction
                + 4 * T * Bp * Hp                # context accumulation
                + 2 * Bp * Hp * outw)            # fc head
    transcendentals = int(4 * T * Bp * Hp + T * Bp + Bp * outw)
    inputs = (x_flat,) + tuple(prepped)
    bytes_accessed = int(sum(int(np.prod(a.shape)) * a.dtype.itemsize for a in inputs)
                         + Bp * outw * 4 + T * Bp * Hp * 4)

    out = pl.pallas_call(
        kernel,
        out_shape=jax.ShapeDtypeStruct((Bp, outw), jnp.float32),
        in_specs=[vmem] * 13,
        out_specs=vmem,
        scratch_shapes=[pltpu.VMEM((T * Bp, Hp), jnp.float32)],   # h_t slab for batched attn
        cost_estimate=pl.CostEstimate(flops=flops,
                                      transcendentals=transcendentals,
                                      bytes_accessed=bytes_accessed),
    )(x_flat, *prepped)
    return out[:B, :]


def init_params(key, input_dim, hidden, output_dim, look_ahead):
    """Deterministic parameter init mirroring the PyTorch module's shapes."""
    ks = jax.random.split(key, 9)
    kh = 1.0 / math.sqrt(hidden)
    ka = 1.0 / math.sqrt(2 * hidden)
    f32 = jnp.float32
    wih = jax.random.uniform(ks[0], (3 * hidden, input_dim), f32, -kh, kh)
    whh = jax.random.uniform(ks[1], (3 * hidden, hidden), f32, -kh, kh)
    bih = jax.random.uniform(ks[2], (3 * hidden,), f32, -kh, kh)
    bhh = jax.random.uniform(ks[3], (3 * hidden,), f32, -kh, kh)
    attn_w = jax.random.uniform(ks[4], (hidden, 2 * hidden), f32, -ka, ka)
    attn_b = jax.random.uniform(ks[5], (hidden,), f32, -ka, ka)
    v = jax.random.normal(ks[6], (hidden,), f32) * kh
    fc_w = jax.random.uniform(ks[7], (output_dim * look_ahead, hidden), f32, -kh, kh)
    fc_b = jax.random.uniform(ks[8], (output_dim * look_ahead,), f32, -kh, kh)
    return (wih, whh, bih, bhh, attn_w, attn_b, v, fc_w, fc_b)


def _reference_forward(x, params, hidden, look_ahead):
    """Plain-JAX reference for correctness checking (matches the PyTorch module)."""
    wih, whh, bih, bhh, attn_w, attn_b, v, fc_w, fc_b = params
    B, T, D = x.shape
    H = hidden
    L = look_ahead

    def step(h, x_t):
        gi = x_t @ wih.T + bih
        gh = h @ whh.T + bhh
        r = jax.nn.sigmoid(gi[:, :H] + gh[:, :H])
        z = jax.nn.sigmoid(gi[:, H:2 * H] + gh[:, H:2 * H])
        n = jnp.tanh(gi[:, 2 * H:] + r * gh[:, 2 * H:])
        h_new = (1.0 - z) * n + z * h
        return h_new, h_new

    h0 = jnp.zeros((B, H), jnp.float32)
    hT, outs = lax.scan(step, h0, jnp.transpose(x, (1, 0, 2)))
    enc = jnp.transpose(outs, (1, 0, 2))                           # (B, T, H)
    hns = jnp.broadcast_to(hT[:, None, :], (B, T, H))
    energy = jnp.tanh(jnp.concatenate([hns, enc], axis=2) @ attn_w.T + attn_b)
    scores = jnp.einsum('h,bth->bt', v, energy)
    attn = jax.nn.softmax(scores, axis=1)
    context = jnp.einsum('bt,bth->bh', attn, enc)
    fc = context @ fc_w.T + fc_b
    sig = jax.nn.sigmoid(fc)
    col = jnp.arange(fc.shape[1])[None, :]
    return jnp.where(col < L, 2 * sig - 1,
           jnp.where(col < 2 * L, 10 * (2 * sig - 1), 10 * sig))


if __name__ == "__main__":
    # Small shapes consistent with the module: GRUModel_S(inputDim=4, hiddenNum=32,
    # outputDim=3, lookAhead=1, layerNum=1), batch=2, seq len (lag) = 8.
    B, T, D, H, L, OUT_DIM = 2, 8, 4, 32, 1, 3

    key = jax.random.PRNGKey(0)
    kx, kp = jax.random.split(key)
    x = jax.random.normal(kx, (B, T, D), jnp.float32)
    params = init_params(kp, D, H, OUT_DIM, L)
    prepped = prepare_params(params, hidden=H, look_ahead=L)   # one-time weight prep

    out = jax.block_until_ready(gru_model_s_forward(x, prepped))
    ref = jax.block_until_ready(_reference_forward(x, params, H, L))

    assert out.shape == (B, OUT_DIM * L)
    # Kernel uses bf16 MXU operands (TPU-native path; same as DEFAULT-precision f32
    # matmuls on TPU) with f32 elementwise math; tolerance sized for bf16 accumulation
    # through the T=8 recurrence on outputs spanning roughly [-10, 10].
    assert np.allclose(np.asarray(out), np.asarray(ref), rtol=2e-2, atol=2e-2), (
        "mismatch vs plain-JAX reference")
    print("KERNEL_OK")
</pallas_src>

<mosaic_0001>
module attributes {stable_mosaic.version = 11 : i64} {
  func.func @kernel(%arg0: memref<64x4xbf16, #tpu.memory_space<vmem>>, %arg1: memref<4x384xbf16, #tpu.memory_space<vmem>>, %arg2: memref<128x384xbf16, #tpu.memory_space<vmem>>, %arg3: memref<1x384xf32, #tpu.memory_space<vmem>>, %arg4: memref<1x128xf32, #tpu.memory_space<vmem>>, %arg5: memref<128x128xbf16, #tpu.memory_space<vmem>>, %arg6: memref<128x128xbf16, #tpu.memory_space<vmem>>, %arg7: memref<1x128xf32, #tpu.memory_space<vmem>>, %arg8: memref<128x1xbf16, #tpu.memory_space<vmem>>, %arg9: memref<128x3xbf16, #tpu.memory_space<vmem>>, %arg10: memref<1x3xf32, #tpu.memory_space<vmem>>, %arg11: memref<1x3xf32, #tpu.memory_space<vmem>>, %arg12: memref<1x3xf32, #tpu.memory_space<vmem>>, %arg13: memref<8x3xf32, #tpu.memory_space<vmem>>, %arg14: memref<64x128xf32, #tpu.memory_space<vmem>>) attributes {dimension_semantics = [], scalar_prefetch = 0 : i64, scratch_operands = 1 : i64, tpu.core_type = #tpu.core_type<tc>} {
    %c0 = arith.constant 0 : index
    %c0_0 = arith.constant 0 : index
    %0 = vector.load %arg0[%c0, %c0_0] : memref<64x4xbf16, #tpu.memory_space<vmem>>, vector<64x4xbf16>
    %c0_1 = arith.constant 0 : index
    %c0_2 = arith.constant 0 : index
    %1 = vector.load %arg1[%c0_1, %c0_2] : memref<4x384xbf16, #tpu.memory_space<vmem>>, vector<4x384xbf16>
    %cst = arith.constant dense<0.000000e+00> : vector<64x384xf32>
    %2 = tpu.matmul %0, %1, %cst {dimension_numbers = #tpu.dot_dimension_numbers<[1], [0], [0], [1], [0, 0, 1, 1], [], []>} : vector<64x4xbf16>, vector<4x384xbf16>, vector<64x384xf32> -> vector<64x384xf32>
    %c0_3 = arith.constant 0 : index
    %c0_4 = arith.constant 0 : index
    %3 = vector.load %arg3[%c0_3, %c0_4] : memref<1x384xf32, #tpu.memory_space<vmem>>, vector<1x384xf32>
    %4 = vector.broadcast %3 : vector<1x384xf32> to vector<64x384xf32>
    %5 = arith.addf %2, %4 : vector<64x384xf32>
    %6 = vector.extract_strided_slice %5 {offsets = [0, 0], sizes = [64, 128], strides = [1, 1]} : vector<64x384xf32> to vector<64x128xf32>
    %7 = vector.extract_strided_slice %5 {offsets = [0, 128], sizes = [64, 128], strides = [1, 1]} : vector<64x384xf32> to vector<64x128xf32>
    %8 = vector.extract_strided_slice %5 {offsets = [0, 256], sizes = [64, 128], strides = [1, 1]} : vector<64x384xf32> to vector<64x128xf32>
    %c0_5 = arith.constant 0 : index
    %c0_6 = arith.constant 0 : index
    %9 = vector.load %arg2[%c0_5, %c0_6] : memref<128x384xbf16, #tpu.memory_space<vmem>>, vector<128x384xbf16>
    %c0_7 = arith.constant 0 : index
    %c0_8 = arith.constant 0 : index
    %10 = vector.load %arg4[%c0_7, %c0_8] : memref<1x128xf32, #tpu.memory_space<vmem>>, vector<1x128xf32>
    %cst_9 = arith.constant 0.000000e+00 : f32
    %11 = vector.broadcast %cst_9 : f32 to vector<8x128xf32>
    %12 = arith.truncf %11 : vector<8x128xf32> to vector<8x128xbf16>
    %cst_10 = arith.constant dense<0.000000e+00> : vector<8x384xf32>
    %13 = tpu.matmul %12, %9, %cst_10 {dimension_numbers = #tpu.dot_dimension_numbers<[1], [0], [0], [1], [0, 0, 1, 1], [], []>} : vector<8x128xbf16>, vector<128x384xbf16>, vector<8x384xf32> -> vector<8x384xf32>
    %14 = vector.extract_strided_slice %6 {offsets = [0, 0], sizes = [8, 128], strides = [1, 1]} : vector<64x128xf32> to vector<8x128xf32>
    %15 = vector.extract_strided_slice %13 {offsets = [0, 0], sizes = [8, 128], strides = [1, 1]} : vector<8x384xf32> to vector<8x128xf32>
    %16 = arith.addf %14, %15 : vector<8x128xf32>
    %17 = arith.negf %16 : vector<8x128xf32>
    %18 = math.exp %17 : vector<8x128xf32>
    %cst_11 = arith.constant 1.000000e+00 : f32
    %19 = vector.broadcast %cst_11 : f32 to vector<8x128xf32>
    %20 = arith.addf %19, %18 : vector<8x128xf32>
    %21 = arith.divf %19, %20 : vector<8x128xf32>
    %22 = vector.extract_strided_slice %7 {offsets = [0, 0], sizes = [8, 128], strides = [1, 1]} : vector<64x128xf32> to vector<8x128xf32>
    %23 = vector.extract_strided_slice %13 {offsets = [0, 128], sizes = [8, 128], strides = [1, 1]} : vector<8x384xf32> to vector<8x128xf32>
    %24 = arith.addf %22, %23 : vector<8x128xf32>
    %25 = arith.negf %24 : vector<8x128xf32>
    %26 = math.exp %25 : vector<8x128xf32>
    %cst_12 = arith.constant 1.000000e+00 : f32
    %27 = vector.broadcast %cst_12 : f32 to vector<8x128xf32>
    %28 = arith.addf %27, %26 : vector<8x128xf32>
    %29 = arith.divf %27, %28 : vector<8x128xf32>
    %30 = vector.extract_strided_slice %8 {offsets = [0, 0], sizes = [8, 128], strides = [1, 1]} : vector<64x128xf32> to vector<8x128xf32>
    %31 = vector.extract_strided_slice %13 {offsets = [0, 256], sizes = [8, 128], strides = [1, 1]} : vector<8x384xf32> to vector<8x128xf32>
    %32 = vector.broadcast %10 : vector<1x128xf32> to vector<8x128xf32>
    %33 = arith.addf %31, %32 : vector<8x128xf32>
    %34 = arith.mulf %21, %33 : vector<8x128xf32>
    %35 = arith.addf %30, %34 : vector<8x128xf32>
    %36 = math.tanh %35 : vector<8x128xf32>
    %cst_13 = arith.constant 1.000000e+00 : f32
    %37 = vector.broadcast %cst_13 : f32 to vector<8x128xf32>
    %38 = arith.subf %37, %29 : vector<8x128xf32>
    %39 = arith.mulf %38, %36 : vector<8x128xf32>
    %40 = arith.mulf %29, %11 : vector<8x128xf32>
    %41 = arith.addf %39, %40 : vector<8x128xf32>
    %c0_14 = arith.constant 0 : index
    %c0_15 = arith.constant 0 : index
    %42 = vector.load %arg14[%c0_14, %c0_15] : memref<64x128xf32, #tpu.memory_space<vmem>>, vector<8x128xf32>
    tpu.vector_store %arg14[%c0_14, %c0_15], %41 {strides = array<i32>} : memref<64x128xf32, #tpu.memory_space<vmem>>, vector<8x128xf32>,
    %43 = arith.truncf %41 : vector<8x128xf32> to vector<8x128xbf16>
    %cst_16 = arith.constant dense<0.000000e+00> : vector<8x384xf32>
    %44 = tpu.matmul %43, %9, %cst_16 {dimension_numbers = #tpu.dot_dimension_numbers<[1], [0], [0], [1], [0, 0, 1, 1], [], []>} : vector<8x128xbf16>, vector<128x384xbf16>, vector<8x384xf32> -> vector<8x384xf32>
    %45 = vector.extract_strided_slice %6 {offsets = [8, 0], sizes = [8, 128], strides = [1, 1]} : vector<64x128xf32> to vector<8x128xf32>
    %46 = vector.extract_strided_slice %44 {offsets = [0, 0], sizes = [8, 128], strides = [1, 1]} : vector<8x384xf32> to vector<8x128xf32>
    %47 = arith.addf %45, %46 : vector<8x128xf32>
    %48 = arith.negf %47 : vector<8x128xf32>
    %49 = math.exp %48 : vector<8x128xf32>
    %cst_17 = arith.constant 1.000000e+00 : f32
    %50 = vector.broadcast %cst_17 : f32 to vector<8x128xf32>
    %51 = arith.addf %50, %49 : vector<8x128xf32>
    %52 = arith.divf %50, %51 : vector<8x128xf32>
    %53 = vector.extract_strided_slice %7 {offsets = [8, 0], sizes = [8, 128], strides = [1, 1]} : vector<64x128xf32> to vector<8x128xf32>
    %54 = vector.extract_strided_slice %44 {offsets = [0, 128], sizes = [8, 128], strides = [1, 1]} : vector<8x384xf32> to vector<8x128xf32>
    %55 = arith.addf %53, %54 : vector<8x128xf32>
    %56 = arith.negf %55 : vector<8x128xf32>
    %57 = math.exp %56 : vector<8x128xf32>
    %cst_18 = arith.constant 1.000000e+00 : f32
    %58 = vector.broadcast %cst_18 : f32 to vector<8x128xf32>
    %59 = arith.addf %58, %57 : vector<8x128xf32>
    %60 = arith.divf %58, %59 : vector<8x128xf32>
    %61 = vector.extract_strided_slice %8 {offsets = [8, 0], sizes = [8, 128], strides = [1, 1]} : vector<64x128xf32> to vector<8x128xf32>
    %62 = vector.extract_strided_slice %44 {offsets = [0, 256], sizes = [8, 128], strides = [1, 1]} : vector<8x384xf32> to vector<8x128xf32>
    %63 = vector.broadcast %10 : vector<1x128xf32> to vector<8x128xf32>
    %64 = arith.addf %62, %63 : vector<8x128xf32>
    %65 = arith.mulf %52, %64 : vector<8x128xf32>
    %66 = arith.addf %61, %65 : vector<8x128xf32>
    %67 = math.tanh %66 : vector<8x128xf32>
    %cst_19 = arith.constant 1.000000e+00 : f32
    %68 = vector.broadcast %cst_19 : f32 to vector<8x128xf32>
    %69 = arith.subf %68, %60 : vector<8x128xf32>
    %70 = arith.mulf %69, %67 : vector<8x128xf32>
    %71 = arith.mulf %60, %41 : vector<8x128xf32>
    %72 = arith.addf %70, %71 : vector<8x128xf32>
    %c8 = arith.constant 8 : index
    %c0_20 = arith.constant 0 : index
    %73 = vector.load %arg14[%c8, %c0_20] : memref<64x128xf32, #tpu.memory_space<vmem>>, vector<8x128xf32>
    tpu.vector_store %arg14[%c8, %c0_20], %72 {strides = array<i32>} : memref<64x128xf32, #tpu.memory_space<vmem>>, vector<8x128xf32>,
    %74 = arith.truncf %72 : vector<8x128xf32> to vector<8x128xbf16>
    %cst_21 = arith.constant dense<0.000000e+00> : vector<8x384xf32>
    %75 = tpu.matmul %74, %9, %cst_21 {dimension_numbers = #tpu.dot_dimension_numbers<[1], [0], [0], [1], [0, 0, 1, 1], [], []>} : vector<8x128xbf16>, vector<128x384xbf16>, vector<8x384xf32> -> vector<8x384xf32>
    %76 = vector.extract_strided_slice %6 {offsets = [16, 0], sizes = [8, 128], strides = [1, 1]} : vector<64x128xf32> to vector<8x128xf32>
    %77 = vector.extract_strided_slice %75 {offsets = [0, 0], sizes = [8, 128], strides = [1, 1]} : vector<8x384xf32> to vector<8x128xf32>
    %78 = arith.addf %76, %77 : vector<8x128xf32>
    %79 = arith.negf %78 : vector<8x128xf32>
    %80 = math.exp %79 : vector<8x128xf32>
    %cst_22 = arith.constant 1.000000e+00 : f32
    %81 = vector.broadcast %cst_22 : f32 to vector<8x128xf32>
    %82 = arith.addf %81, %80 : vector<8x128xf32>
    %83 = arith.divf %81, %82 : vector<8x128xf32>
    %84 = vector.extract_strided_slice %7 {offsets = [16, 0], sizes = [8, 128], strides = [1, 1]} : vector<64x128xf32> to vector<8x128xf32>
    %85 = vector.extract_strided_slice %75 {offsets = [0, 128], sizes = [8, 128], strides = [1, 1]} : vector<8x384xf32> to vector<8x128xf32>
    %86 = arith.addf %84, %85 : vector<8x128xf32>
    %87 = arith.negf %86 : vector<8x128xf32>
    %88 = math.exp %87 : vector<8x128xf32>
    %cst_23 = arith.constant 1.000000e+00 : f32
    %89 = vector.broadcast %cst_23 : f32 to vector<8x128xf32>
    %90 = arith.addf %89, %88 : vector<8x128xf32>
    %91 = arith.divf %89, %90 : vector<8x128xf32>
    %92 = vector.extract_strided_slice %8 {offsets = [16, 0], sizes = [8, 128], strides = [1, 1]} : vector<64x128xf32> to vector<8x128xf32>
    %93 = vector.extract_strided_slice %75 {offsets = [0, 256], sizes = [8, 128], strides = [1, 1]} : vector<8x384xf32> to vector<8x128xf32>
    %94 = vector.broadcast %10 : vector<1x128xf32> to vector<8x128xf32>
    %95 = arith.addf %93, %94 : vector<8x128xf32>
    %96 = arith.mulf %83, %95 : vector<8x128xf32>
    %97 = arith.addf %92, %96 : vector<8x128xf32>
    %98 = math.tanh %97 : vector<8x128xf32>
    %cst_24 = arith.constant 1.000000e+00 : f32
    %99 = vector.broadcast %cst_24 : f32 to vector<8x128xf32>
    %100 = arith.subf %99, %91 : vector<8x128xf32>
    %101 = arith.mulf %100, %98 : vector<8x128xf32>
    %102 = arith.mulf %91, %72 : vector<8x128xf32>
    %103 = arith.addf %101, %102 : vector<8x128xf32>
    %c16 = arith.constant 16 : index
    %c0_25 = arith.constant 0 : index
    %104 = vector.load %arg14[%c16, %c0_25] : memref<64x128xf32, #tpu.memory_space<vmem>>, vector<8x128xf32>
    tpu.vector_store %arg14[%c16, %c0_25], %103 {strides = array<i32>} : memref<64x128xf32, #tpu.memory_space<vmem>>, vector<8x128xf32>,
    %105 = arith.truncf %103 : vector<8x128xf32> to vector<8x128xbf16>
    %cst_26 = arith.constant dense<0.000000e+00> : vector<8x384xf32>
    %106 = tpu.matmul %105, %9, %cst_26 {dimension_numbers = #tpu.dot_dimension_numbers<[1], [0], [0], [1], [0, 0, 1, 1], [], []>} : vector<8x128xbf16>, vector<128x384xbf16>, vector<8x384xf32> -> vector<8x384xf32>
    %107 = vector.extract_strided_slice %6 {offsets = [24, 0], sizes = [8, 128], strides = [1, 1]} : vector<64x128xf32> to vector<8x128xf32>
    %108 = vector.extract_strided_slice %106 {offsets = [0, 0], sizes = [8, 128], strides = [1, 1]} : vector<8x384xf32> to vector<8x128xf32>
    %109 = arith.addf %107, %108 : vector<8x128xf32>
    %110 = arith.negf %109 : vector<8x128xf32>
    %111 = math.exp %110 : vector<8x128xf32>
    %cst_27 = arith.constant 1.000000e+00 : f32
    %112 = vector.broadcast %cst_27 : f32 to vector<8x128xf32>
    %113 = arith.addf %112, %111 : vector<8x128xf32>
    %114 = arith.divf %112, %113 : vector<8x128xf32>
    %115 = vector.extract_strided_slice %7 {offsets = [24, 0], sizes = [8, 128], strides = [1, 1]} : vector<64x128xf32> to vector<8x128xf32>
    %116 = vector.extract_strided_slice %106 {offsets = [0, 128], sizes = [8, 128], strides = [1, 1]} : vector<8x384xf32> to vector<8x128xf32>
    %117 = arith.addf %115, %116 : vector<8x128xf32>
    %118 = arith.negf %117 : vector<8x128xf32>
    %119 = math.exp %118 : vector<8x128xf32>
    %cst_28 = arith.constant 1.000000e+00 : f32
    %120 = vector.broadcast %cst_28 : f32 to vector<8x128xf32>
    %121 = arith.addf %120, %119 : vector<8x128xf32>
    %122 = arith.divf %120, %121 : vector<8x128xf32>
    %123 = vector.extract_strided_slice %8 {offsets = [24, 0], sizes = [8, 128], strides = [1, 1]} : vector<64x128xf32> to vector<8x128xf32>
    %124 = vector.extract_strided_slice %106 {offsets = [0, 256], sizes = [8, 128], strides = [1, 1]} : vector<8x384xf32> to vector<8x128xf32>
    %125 = vector.broadcast %10 : vector<1x128xf32> to vector<8x128xf32>
    %126 = arith.addf %124, %125 : vector<8x128xf32>
    %127 = arith.mulf %114, %126 : vector<8x128xf32>
    %128 = arith.addf %123, %127 : vector<8x128xf32>
    %129 = math.tanh %128 : vector<8x128xf32>
    %cst_29 = arith.constant 1.000000e+00 : f32
    %130 = vector.broadcast %cst_29 : f32 to vector<8x128xf32>
    %131 = arith.subf %130, %122 : vector<8x128xf32>
    %132 = arith.mulf %131, %129 : vector<8x128xf32>
    %133 = arith.mulf %122, %103 : vector<8x128xf32>
    %134 = arith.addf %132, %133 : vector<8x128xf32>
    %c24 = arith.constant 24 : index
    %c0_30 = arith.constant 0 : index
    %135 = vector.load %arg14[%c24, %c0_30] : memref<64x128xf32, #tpu.memory_space<vmem>>, vector<8x128xf32>
    tpu.vector_store %arg14[%c24, %c0_30], %134 {strides = array<i32>} : memref<64x128xf32, #tpu.memory_space<vmem>>, vector<8x128xf32>,
    %136 = arith.truncf %134 : vector<8x128xf32> to vector<8x128xbf16>
    %cst_31 = arith.constant dense<0.000000e+00> : vector<8x384xf32>
    %137 = tpu.matmul %136, %9, %cst_31 {dimension_numbers = #tpu.dot_dimension_numbers<[1], [0], [0], [1], [0, 0, 1, 1], [], []>} : vector<8x128xbf16>, vector<128x384xbf16>, vector<8x384xf32> -> vector<8x384xf32>
    %138 = vector.extract_strided_slice %6 {offsets = [32, 0], sizes = [8, 128], strides = [1, 1]} : vector<64x128xf32> to vector<8x128xf32>
    %139 = vector.extract_strided_slice %137 {offsets = [0, 0], sizes = [8, 128], strides = [1, 1]} : vector<8x384xf32> to vector<8x128xf32>
    %140 = arith.addf %138, %139 : vector<8x128xf32>
    %141 = arith.negf %140 : vector<8x128xf32>
    %142 = math.exp %141 : vector<8x128xf32>
    %cst_32 = arith.constant 1.000000e+00 : f32
    %143 = vector.broadcast %cst_32 : f32 to vector<8x128xf32>
    %144 = arith.addf %143, %142 : vector<8x128xf32>
    %145 = arith.divf %143, %144 : vector<8x128xf32>
    %146 = vector.extract_strided_slice %7 {offsets = [32, 0], sizes = [8, 128], strides = [1, 1]} : vector<64x128xf32> to vector<8x128xf32>
    %147 = vector.extract_strided_slice %137 {offsets = [0, 128], sizes = [8, 128], strides = [1, 1]} : vector<8x384xf32> to vector<8x128xf32>
    %148 = arith.addf %146, %147 : vector<8x128xf32>
    %149 = arith.negf %148 : vector<8x128xf32>
    %150 = math.exp %149 : vector<8x128xf32>
    %cst_33 = arith.constant 1.000000e+00 : f32
    %151 = vector.broadcast %cst_33 : f32 to vector<8x128xf32>
    %152 = arith.addf %151, %150 : vector<8x128xf32>
    %153 = arith.divf %151, %152 : vector<8x128xf32>
    %154 = vector.extract_strided_slice %8 {offsets = [32, 0], sizes = [8, 128], strides = [1, 1]} : vector<64x128xf32> to vector<8x128xf32>
    %155 = vector.extract_strided_slice %137 {offsets = [0, 256], sizes = [8, 128], strides = [1, 1]} : vector<8x384xf32> to vector<8x128xf32>
    %156 = vector.broadcast %10 : vector<1x128xf32> to vector<8x128xf32>
    %157 = arith.addf %155, %156 : vector<8x128xf32>
    %158 = arith.mulf %145, %157 : vector<8x128xf32>
    %159 = arith.addf %154, %158 : vector<8x128xf32>
    %160 = math.tanh %159 : vector<8x128xf32>
    %cst_34 = arith.constant 1.000000e+00 : f32
    %161 = vector.broadcast %cst_34 : f32 to vector<8x128xf32>
    %162 = arith.subf %161, %153 : vector<8x128xf32>
    %163 = arith.mulf %162, %160 : vector<8x128xf32>
    %164 = arith.mulf %153, %134 : vector<8x128xf32>
    %165 = arith.addf %163, %164 : vector<8x128xf32>
    %c32 = arith.constant 32 : index
    %c0_35 = arith.constant 0 : index
    %166 = vector.load %arg14[%c32, %c0_35] : memref<64x128xf32, #tpu.memory_space<vmem>>, vector<8x128xf32>
    tpu.vector_store %arg14[%c32, %c0_35], %165 {strides = array<i32>} : memref<64x128xf32, #tpu.memory_space<vmem>>, vector<8x128xf32>,
    %167 = arith.truncf %165 : vector<8x128xf32> to vector<8x128xbf16>
    %cst_36 = arith.constant dense<0.000000e+00> : vector<8x384xf32>
    %168 = tpu.matmul %167, %9, %cst_36 {dimension_numbers = #tpu.dot_dimension_numbers<[1], [0], [0], [1], [0, 0, 1, 1], [], []>} : vector<8x128xbf16>, vector<128x384xbf16>, vector<8x384xf32> -> vector<8x384xf32>
    %169 = vector.extract_strided_slice %6 {offsets = [40, 0], sizes = [8, 128], strides = [1, 1]} : vector<64x128xf32> to vector<8x128xf32>
    %170 = vector.extract_strided_slice %168 {offsets = [0, 0], sizes = [8, 128], strides = [1, 1]} : vector<8x384xf32> to vector<8x128xf32>
    %171 = arith.addf %169, %170 : vector<8x128xf32>
    %172 = arith.negf %171 : vector<8x128xf32>
    %173 = math.exp %172 : vector<8x128xf32>
    %cst_37 = arith.constant 1.000000e+00 : f32
    %174 = vector.broadcast %cst_37 : f32 to vector<8x128xf32>
    %175 = arith.addf %174, %173 : vector<8x128xf32>
    %176 = arith.divf %174, %175 : vector<8x128xf32>
    %177 = vector.extract_strided_slice %7 {offsets = [40, 0], sizes = [8, 128], strides = [1, 1]} : vector<64x128xf32> to vector<8x128xf32>
    %178 = vector.extract_strided_slice %168 {offsets = [0, 128], sizes = [8, 128], strides = [1, 1]} : vector<8x384xf32> to vector<8x128xf32>
    %179 = arith.addf %177, %178 : vector<8x128xf32>
    %180 = arith.negf %179 : vector<8x128xf32>
    %181 = math.exp %180 : vector<8x128xf32>
    %cst_38 = arith.constant 1.000000e+00 : f32
    %182 = vector.broadcast %cst_38 : f32 to vector<8x128xf32>
    %183 = arith.addf %182, %181 : vector<8x128xf32>
    %184 = arith.divf %182, %183 : vector<8x128xf32>
    %185 = vector.extract_strided_slice %8 {offsets = [40, 0], sizes = [8, 128], strides = [1, 1]} : vector<64x128xf32> to vector<8x128xf32>
    %186 = vector.extract_strided_slice %168 {offsets = [0, 256], sizes = [8, 128], strides = [1, 1]} : vector<8x384xf32> to vector<8x128xf32>
    %187 = vector.broadcast %10 : vector<1x128xf32> to vector<8x128xf32>
    %188 = arith.addf %186, %187 : vector<8x128xf32>
    %189 = arith.mulf %176, %188 : vector<8x128xf32>
    %190 = arith.addf %185, %189 : vector<8x128xf32>
    %191 = math.tanh %190 : vector<8x128xf32>
    %cst_39 = arith.constant 1.000000e+00 : f32
    %192 = vector.broadcast %cst_39 : f32 to vector<8x128xf32>
    %193 = arith.subf %192, %184 : vector<8x128xf32>
    %194 = arith.mulf %193, %191 : vector<8x128xf32>
    %195 = arith.mulf %184, %165 : vector<8x128xf32>
    %196 = arith.addf %194, %195 : vector<8x128xf32>
    %c40 = arith.constant 40 : index
    %c0_40 = arith.constant 0 : index
    %197 = vector.load %arg14[%c40, %c0_40] : memref<64x128xf32, #tpu.memory_space<vmem>>, vector<8x128xf32>
    tpu.vector_store %arg14[%c40, %c0_40], %196 {strides = array<i32>} : memref<64x128xf32, #tpu.memory_space<vmem>>, vector<8x128xf32>,
    %198 = arith.truncf %196 : vector<8x128xf32> to vector<8x128xbf16>
    %cst_41 = arith.constant dense<0.000000e+00> : vector<8x384xf32>
    %199 = tpu.matmul %198, %9, %cst_41 {dimension_numbers = #tpu.dot_dimension_numbers<[1], [0], [0], [1], [0, 0, 1, 1], [], []>} : vector<8x128xbf16>, vector<128x384xbf16>, vector<8x384xf32> -> vector<8x384xf32>
    %200 = vector.extract_strided_slice %6 {offsets = [48, 0], sizes = [8, 128], strides = [1, 1]} : vector<64x128xf32> to vector<8x128xf32>
    %201 = vector.extract_strided_slice %199 {offsets = [0, 0], sizes = [8, 128], strides = [1, 1]} : vector<8x384xf32> to vector<8x128xf32>
    %202 = arith.addf %200, %201 : vector<8x128xf32>
    %203 = arith.negf %202 : vector<8x128xf32>
    %204 = math.exp %203 : vector<8x128xf32>
    %cst_42 = arith.constant 1.000000e+00 : f32
    %205 = vector.broadcast %cst_42 : f32 to vector<8x128xf32>
    %206 = arith.addf %205, %204 : vector<8x128xf32>
    %207 = arith.divf %205, %206 : vector<8x128xf32>
    %208 = vector.extract_strided_slice %7 {offsets = [48, 0], sizes = [8, 128], strides = [1, 1]} : vector<64x128xf32> to vector<8x128xf32>
    %209 = vector.extract_strided_slice %199 {offsets = [0, 128], sizes = [8, 128], strides = [1, 1]} : vector<8x384xf32> to vector<8x128xf32>
    %210 = arith.addf %208, %209 : vector<8x128xf32>
    %211 = arith.negf %210 : vector<8x128xf32>
    %212 = math.exp %211 : vector<8x128xf32>
    %cst_43 = arith.constant 1.000000e+00 : f32
    %213 = vector.broadcast %cst_43 : f32 to vector<8x128xf32>
    %214 = arith.addf %213, %212 : vector<8x128xf32>
    %215 = arith.divf %213, %214 : vector<8x128xf32>
    %216 = vector.extract_strided_slice %8 {offsets = [48, 0], sizes = [8, 128], strides = [1, 1]} : vector<64x128xf32> to vector<8x128xf32>
    %217 = vector.extract_strided_slice %199 {offsets = [0, 256], sizes = [8, 128], strides = [1, 1]} : vector<8x384xf32> to vector<8x128xf32>
    %218 = vector.broadcast %10 : vector<1x128xf32> to vector<8x128xf32>
    %219 = arith.addf %217, %218 : vector<8x128xf32>
    %220 = arith.mulf %207, %219 : vector<8x128xf32>
    %221 = arith.addf %216, %220 : vector<8x128xf32>
    %222 = math.tanh %221 : vector<8x128xf32>
    %cst_44 = arith.constant 1.000000e+00 : f32
    %223 = vector.broadcast %cst_44 : f32 to vector<8x128xf32>
    %224 = arith.subf %223, %215 : vector<8x128xf32>
    %225 = arith.mulf %224, %222 : vector<8x128xf32>
    %226 = arith.mulf %215, %196 : vector<8x128xf32>
    %227 = arith.addf %225, %226 : vector<8x128xf32>
    %c48 = arith.constant 48 : index
    %c0_45 = arith.constant 0 : index
    %228 = vector.load %arg14[%c48, %c0_45] : memref<64x128xf32, #tpu.memory_space<vmem>>, vector<8x128xf32>
    tpu.vector_store %arg14[%c48, %c0_45], %227 {strides = array<i32>} : memref<64x128xf32, #tpu.memory_space<vmem>>, vector<8x128xf32>,
    %229 = arith.truncf %227 : vector<8x128xf32> to vector<8x128xbf16>
    %cst_46 = arith.constant dense<0.000000e+00> : vector<8x384xf32>
    %230 = tpu.matmul %229, %9, %cst_46 {dimension_numbers = #tpu.dot_dimension_numbers<[1], [0], [0], [1], [0, 0, 1, 1], [], []>} : vector<8x128xbf16>, vector<128x384xbf16>, vector<8x384xf32> -> vector<8x384xf32>
    %231 = vector.extract_strided_slice %6 {offsets = [56, 0], sizes = [8, 128], strides = [1, 1]} : vector<64x128xf32> to vector<8x128xf32>
    %232 = vector.extract_strided_slice %230 {offsets = [0, 0], sizes = [8, 128], strides = [1, 1]} : vector<8x384xf32> to vector<8x128xf32>
    %233 = arith.addf %231, %232 : vector<8x128xf32>
    %234 = arith.negf %233 : vector<8x128xf32>
    %235 = math.exp %234 : vector<8x128xf32>
    %cst_47 = arith.constant 1.000000e+00 : f32
    %236 = vector.broadcast %cst_47 : f32 to vector<8x128xf32>
    %237 = arith.addf %236, %235 : vector<8x128xf32>
    %238 = arith.divf %236, %237 : vector<8x128xf32>
    %239 = vector.extract_strided_slice %7 {offsets = [56, 0], sizes = [8, 128], strides = [1, 1]} : vector<64x128xf32> to vector<8x128xf32>
    %240 = vector.extract_strided_slice %230 {offsets = [0, 128], sizes = [8, 128], strides = [1, 1]} : vector<8x384xf32> to vector<8x128xf32>
    %241 = arith.addf %239, %240 : vector<8x128xf32>
    %242 = arith.negf %241 : vector<8x128xf32>
    %243 = math.exp %242 : vector<8x128xf32>
    %cst_48 = arith.constant 1.000000e+00 : f32
    %244 = vector.broadcast %cst_48 : f32 to vector<8x128xf32>
    %245 = arith.addf %244, %243 : vector<8x128xf32>
    %246 = arith.divf %244, %245 : vector<8x128xf32>
    %247 = vector.extract_strided_slice %8 {offsets = [56, 0], sizes = [8, 128], strides = [1, 1]} : vector<64x128xf32> to vector<8x128xf32>
    %248 = vector.extract_strided_slice %230 {offsets = [0, 256], sizes = [8, 128], strides = [1, 1]} : vector<8x384xf32> to vector<8x128xf32>
    %249 = vector.broadcast %10 : vector<1x128xf32> to vector<8x128xf32>
    %250 = arith.addf %248, %249 : vector<8x128xf32>
    %251 = arith.mulf %238, %250 : vector<8x128xf32>
    %252 = arith.addf %247, %251 : vector<8x128xf32>
    %253 = math.tanh %252 : vector<8x128xf32>
    %cst_49 = arith.constant 1.000000e+00 : f32
    %254 = vector.broadcast %cst_49 : f32 to vector<8x128xf32>
    %255 = arith.subf %254, %246 : vector<8x128xf32>
    %256 = arith.mulf %255, %253 : vector<8x128xf32>
    %257 = arith.mulf %246, %227 : vector<8x128xf32>
    %258 = arith.addf %256, %257 : vector<8x128xf32>
    %c56 = arith.constant 56 : index
    %c0_50 = arith.constant 0 : index
    %259 = vector.load %arg14[%c56, %c0_50] : memref<64x128xf32, #tpu.memory_space<vmem>>, vector<8x128xf32>
    tpu.vector_store %arg14[%c56, %c0_50], %258 {strides = array<i32>} : memref<64x128xf32, #tpu.memory_space<vmem>>, vector<8x128xf32>,
    %c0_51 = arith.constant 0 : index
    %c0_52 = arith.constant 0 : index
    %260 = vector.load %arg14[%c0_51, %c0_52] : memref<64x128xf32, #tpu.memory_space<vmem>>, vector<64x128xf32>
    %261 = arith.truncf %258 : vector<8x128xf32> to vector<8x128xbf16>
    %c0_53 = arith.constant 0 : index
    %c0_54 = arith.constant 0 : index
    %262 = vector.load %arg5[%c0_53, %c0_54] : memref<128x128xbf16, #tpu.memory_space<vmem>>, vector<128x128xbf16>
    %cst_55 = arith.constant dense<0.000000e+00> : vector<8x128xf32>
    %263 = tpu.matmul %261, %262, %cst_55 {dimension_numbers = #tpu.dot_dimension_numbers<[1], [0], [0], [1], [0, 0, 1, 1], [], []>} : vector<8x128xbf16>, vector<128x128xbf16>, vector<8x128xf32> -> vector<8x128xf32>
    %c0_56 = arith.constant 0 : index
    %c0_57 = arith.constant 0 : index
    %264 = vector.load %arg7[%c0_56, %c0_57] : memref<1x128xf32, #tpu.memory_space<vmem>>, vector<1x128xf32>
    %265 = vector.broadcast %264 : vector<1x128xf32> to vector<8x128xf32>
    %266 = arith.addf %263, %265 : vector<8x128xf32>
    %267 = tpu.concatenate %266, %266, %266, %266, %266, %266, %266, %266 in 0 : vector<8x128xf32>, vector<8x128xf32>, vector<8x128xf32>, vector<8x128xf32>, vector<8x128xf32>, vector<8x128xf32>, vector<8x128xf32>, vector<8x128xf32> -> vector<64x128xf32>
    %268 = arith.truncf %260 : vector<64x128xf32> to vector<64x128xbf16>
    %c0_58 = arith.constant 0 : index
    %c0_59 = arith.constant 0 : index
    %269 = vector.load %arg6[%c0_58, %c0_59] : memref<128x128xbf16, #tpu.memory_space<vmem>>, vector<128x128xbf16>
    %cst_60 = arith.constant dense<0.000000e+00> : vector<64x128xf32>
    %270 = tpu.matmul %268, %269, %cst_60 {dimension_numbers = #tpu.dot_dimension_numbers<[1], [0], [0], [1], [0, 0, 1, 1], [], []>} : vector<64x128xbf16>, vector<128x128xbf16>, vector<64x128xf32> -> vector<64x128xf32>
    %271 = arith.addf %270, %267 : vector<64x128xf32>
    %272 = math.tanh %271 : vector<64x128xf32>
    %273 = arith.truncf %272 : vector<64x128xf32> to vector<64x128xbf16>
    %c0_61 = arith.constant 0 : index
    %c0_62 = arith.constant 0 : index
    %274 = vector.load %arg8[%c0_61, %c0_62] : memref<128x1xbf16, #tpu.memory_space<vmem>>, vector<128x1xbf16>
    %cst_63 = arith.constant dense<0.000000e+00> : vector<64x1xf32>
    %275 = tpu.matmul %273, %274, %cst_63 {dimension_numbers = #tpu.dot_dimension_numbers<[1], [0], [0], [1], [0, 0, 1, 1], [], []>} : vector<64x128xbf16>, vector<128x1xbf16>, vector<64x1xf32> -> vector<64x1xf32>
    %276 = vector.extract_strided_slice %275 {offsets = [0, 0], sizes = [8, 1], strides = [1, 1]} : vector<64x1xf32> to vector<8x1xf32>
    %277 = vector.extract_strided_slice %275 {offsets = [8, 0], sizes = [8, 1], strides = [1, 1]} : vector<64x1xf32> to vector<8x1xf32>
    %278 = arith.maximumf %276, %277 : vector<8x1xf32>
    %279 = vector.extract_strided_slice %275 {offsets = [16, 0], sizes = [8, 1], strides = [1, 1]} : vector<64x1xf32> to vector<8x1xf32>
    %280 = arith.maximumf %278, %279 : vector<8x1xf32>
    %281 = vector.extract_strided_slice %275 {offsets = [24, 0], sizes = [8, 1], strides = [1, 1]} : vector<64x1xf32> to vector<8x1xf32>
    %282 = arith.maximumf %280, %281 : vector<8x1xf32>
    %283 = vector.extract_strided_slice %275 {offsets = [32, 0], sizes = [8, 1], strides = [1, 1]} : vector<64x1xf32> to vector<8x1xf32>
    %284 = arith.maximumf %282, %283 : vector<8x1xf32>
    %285 = vector.extract_strided_slice %275 {offsets = [40, 0], sizes = [8, 1], strides = [1, 1]} : vector<64x1xf32> to vector<8x1xf32>
    %286 = arith.maximumf %284, %285 : vector<8x1xf32>
    %287 = vector.extract_strided_slice %275 {offsets = [48, 0], sizes = [8, 1], strides = [1, 1]} : vector<64x1xf32> to vector<8x1xf32>
    %288 = arith.maximumf %286, %287 : vector<8x1xf32>
    %289 = vector.extract_strided_slice %275 {offsets = [56, 0], sizes = [8, 1], strides = [1, 1]} : vector<64x1xf32> to vector<8x1xf32>
    %290 = arith.maximumf %288, %289 : vector<8x1xf32>
    %cst_64 = arith.constant 0.000000e+00 : f32
    %291 = vector.broadcast %cst_64 : f32 to vector<8x128xf32>
    %cst_65 = arith.constant 0.000000e+00 : f32
    %292 = vector.broadcast %cst_65 : f32 to vector<8x1xf32>
    %293 = vector.extract_strided_slice %275 {offsets = [0, 0], sizes = [8, 1], strides = [1, 1]} : vector<64x1xf32> to vector<8x1xf32>
    %294 = arith.subf %293, %290 : vector<8x1xf32>
    %295 = math.exp %294 : vector<8x1xf32>
    %296 = arith.addf %292, %295 : vector<8x1xf32>
    %297 = vector.extract_strided_slice %260 {offsets = [0, 0], sizes = [8, 128], strides = [1, 1]} : vector<64x128xf32> to vector<8x128xf32>
    %298 = vector.broadcast %295 : vector<8x1xf32> to vector<8x128xf32>
    %299 = arith.mulf %298, %297 : vector<8x128xf32>
    %300 = arith.addf %291, %299 : vector<8x128xf32>
    %301 = vector.extract_strided_slice %275 {offsets = [8, 0], sizes = [8, 1], strides = [1, 1]} : vector<64x1xf32> to vector<8x1xf32>
    %302 = arith.subf %301, %290 : vector<8x1xf32>
    %303 = math.exp %302 : vector<8x1xf32>
    %304 = arith.addf %296, %303 : vector<8x1xf32>
    %305 = vector.extract_strided_slice %260 {offsets = [8, 0], sizes = [8, 128], strides = [1, 1]} : vector<64x128xf32> to vector<8x128xf32>
    %306 = vector.broadcast %303 : vector<8x1xf32> to vector<8x128xf32>
    %307 = arith.mulf %306, %305 : vector<8x128xf32>
    %308 = arith.addf %300, %307 : vector<8x128xf32>
    %309 = vector.extract_strided_slice %275 {offsets = [16, 0], sizes = [8, 1], strides = [1, 1]} : vector<64x1xf32> to vector<8x1xf32>
    %310 = arith.subf %309, %290 : vector<8x1xf32>
    %311 = math.exp %310 : vector<8x1xf32>
    %312 = arith.addf %304, %311 : vector<8x1xf32>
    %313 = vector.extract_strided_slice %260 {offsets = [16, 0], sizes = [8, 128], strides = [1, 1]} : vector<64x128xf32> to vector<8x128xf32>
    %314 = vector.broadcast %311 : vector<8x1xf32> to vector<8x128xf32>
    %315 = arith.mulf %314, %313 : vector<8x128xf32>
    %316 = arith.addf %308, %315 : vector<8x128xf32>
    %317 = vector.extract_strided_slice %275 {offsets = [24, 0], sizes = [8, 1], strides = [1, 1]} : vector<64x1xf32> to vector<8x1xf32>
    %318 = arith.subf %317, %290 : vector<8x1xf32>
    %319 = math.exp %318 : vector<8x1xf32>
    %320 = arith.addf %312, %319 : vector<8x1xf32>
    %321 = vector.extract_strided_slice %260 {offsets = [24, 0], sizes = [8, 128], strides = [1, 1]} : vector<64x128xf32> to vector<8x128xf32>
    %322 = vector.broadcast %319 : vector<8x1xf32> to vector<8x128xf32>
    %323 = arith.mulf %322, %321 : vector<8x128xf32>
    %324 = arith.addf %316, %323 : vector<8x128xf32>
    %325 = vector.extract_strided_slice %275 {offsets = [32, 0], sizes = [8, 1], strides = [1, 1]} : vector<64x1xf32> to vector<8x1xf32>
    %326 = arith.subf %325, %290 : vector<8x1xf32>
    %327 = math.exp %326 : vector<8x1xf32>
    %328 = arith.addf %320, %327 : vector<8x1xf32>
    %329 = vector.extract_strided_slice %260 {offsets = [32, 0], sizes = [8, 128], strides = [1, 1]} : vector<64x128xf32> to vector<8x128xf32>
    %330 = vector.broadcast %327 : vector<8x1xf32> to vector<8x128xf32>
    %331 = arith.mulf %330, %329 : vector<8x128xf32>
    %332 = arith.addf %324, %331 : vector<8x128xf32>
    %333 = vector.extract_strided_slice %275 {offsets = [40, 0], sizes = [8, 1], strides = [1, 1]} : vector<64x1xf32> to vector<8x1xf32>
    %334 = arith.subf %333, %290 : vector<8x1xf32>
    %335 = math.exp %334 : vector<8x1xf32>
    %336 = arith.addf %328, %335 : vector<8x1xf32>
    %337 = vector.extract_strided_slice %260 {offsets = [40, 0], sizes = [8, 128], strides = [1, 1]} : vector<64x128xf32> to vector<8x128xf32>
    %338 = vector.broadcast %335 : vector<8x1xf32> to vector<8x128xf32>
    %339 = arith.mulf %338, %337 : vector<8x128xf32>
    %340 = arith.addf %332, %339 : vector<8x128xf32>
    %341 = vector.extract_strided_slice %275 {offsets = [48, 0], sizes = [8, 1], strides = [1, 1]} : vector<64x1xf32> to vector<8x1xf32>
    %342 = arith.subf %341, %290 : vector<8x1xf32>
    %343 = math.exp %342 : vector<8x1xf32>
    %344 = arith.addf %336, %343 : vector<8x1xf32>
    %345 = vector.extract_strided_slice %260 {offsets = [48, 0], sizes = [8, 128], strides = [1, 1]} : vector<64x128xf32> to vector<8x128xf32>
    %346 = vector.broadcast %343 : vector<8x1xf32> to vector<8x128xf32>
    %347 = arith.mulf %346, %345 : vector<8x128xf32>
    %348 = arith.addf %340, %347 : vector<8x128xf32>
    %349 = vector.extract_strided_slice %275 {offsets = [56, 0], sizes = [8, 1], strides = [1, 1]} : vector<64x1xf32> to vector<8x1xf32>
    %350 = arith.subf %349, %290 : vector<8x1xf32>
    %351 = math.exp %350 : vector<8x1xf32>
    %352 = arith.addf %344, %351 : vector<8x1xf32>
    %353 = vector.extract_strided_slice %260 {offsets = [56, 0], sizes = [8, 128], strides = [1, 1]} : vector<64x128xf32> to vector<8x128xf32>
    %354 = vector.broadcast %351 : vector<8x1xf32> to vector<8x128xf32>
    %355 = arith.mulf %354, %353 : vector<8x128xf32>
    %356 = arith.addf %348, %355 : vector<8x128xf32>
    %357 = vector.broadcast %352 : vector<8x1xf32> to vector<8x128xf32>
    %358 = arith.divf %356, %357 : vector<8x128xf32>
    %359 = arith.truncf %358 : vector<8x128xf32> to vector<8x128xbf16>
    %c0_66 = arith.constant 0 : index
    %c0_67 = arith.constant 0 : index
    %360 = vector.load %arg9[%c0_66, %c0_67] : memref<128x3xbf16, #tpu.memory_space<vmem>>, vector<128x3xbf16>
    %cst_68 = arith.constant dense<0.000000e+00> : vector<8x3xf32>
    %361 = tpu.matmul %359, %360, %cst_68 {dimension_numbers = #tpu.dot_dimension_numbers<[1], [0], [0], [1], [0, 0, 1, 1], [], []>} : vector<8x128xbf16>, vector<128x3xbf16>, vector<8x3xf32> -> vector<8x3xf32>
    %c0_69 = arith.constant 0 : index
    %c0_70 = arith.constant 0 : index
    %362 = vector.load %arg10[%c0_69, %c0_70] : memref<1x3xf32, #tpu.memory_space<vmem>>, vector<1x3xf32>
    %363 = vector.broadcast %362 : vector<1x3xf32> to vector<8x3xf32>
    %364 = arith.addf %361, %363 : vector<8x3xf32>
    %365 = arith.negf %364 : vector<8x3xf32>
    %366 = math.exp %365 : vector<8x3xf32>
    %cst_71 = arith.constant 1.000000e+00 : f32
    %367 = vector.broadcast %cst_71 : f32 to vector<8x3xf32>
    %368 = arith.addf %367, %366 : vector<8x3xf32>
    %369 = arith.divf %367, %368 : vector<8x3xf32>
    %c0_72 = arith.constant 0 : index
    %c0_73 = arith.constant 0 : index
    %370 = vector.load %arg11[%c0_72, %c0_73] : memref<1x3xf32, #tpu.memory_space<vmem>>, vector<1x3xf32>
    %371 = vector.broadcast %370 : vector<1x3xf32> to vector<8x3xf32>
    %372 = arith.mulf %369, %371 : vector<8x3xf32>
    %c0_74 = arith.constant 0 : index
    %c0_75 = arith.constant 0 : index
    %373 = vector.load %arg12[%c0_74, %c0_75] : memref<1x3xf32, #tpu.memory_space<vmem>>, vector<1x3xf32>
    %374 = vector.broadcast %373 : vector<1x3xf32> to vector<8x3xf32>
    %375 = arith.addf %372, %374 : vector<8x3xf32>
    %c0_76 = arith.constant 0 : index
    %c0_77 = arith.constant 0 : index
    %376 = vector.load %arg13[%c0_76, %c0_77] : memref<8x3xf32, #tpu.memory_space<vmem>>, vector<8x3xf32>
    tpu.vector_store %arg13[%c0_76, %c0_77], %375 {strides = array<i32>} : memref<8x3xf32, #tpu.memory_space<vmem>>, vector<8x3xf32>,
    return
  }
}

</mosaic_0001>

<bundles_post_ra>
// kernel: gru_model_s_forward.1
= control target key start
LH: loop header
LB: loop body
LE: loop exit
PB: predicated region body
PF: predicated region fallthrough
CT: control target
= control target key end

     0   :  { %18 = vsyncpa [#allocation4], 0  ;;  %s3528_s0 = inlined_call_operand.vmem [shape: bf16[64,4], index: 0, kind: input, shape index: {}]   ;;  %s3529_s1 = inlined_call_operand.vmem [shape: bf16[4,384], index: 1, kind: input, shape index: {}]   ;;  %s3530_s2 = inlined_call_operand.vmem [shape: bf16[128,384], index: 2, kind: input, shape index: {}]   ;;  %s3531_s3 = inlined_call_operand.vmem [shape: f32[1,384], index: 3, kind: input, shape index: {}]   ;;  %s3532_s4 = inlined_call_operand.vmem [shape: f32[1,128], index: 4, kind: input, shape index: {}]   ;;  %s3533_s5 = inlined_call_operand.hbm [shape: bf16[128,128], index: 5, kind: input, shape index: {}]   ;;  %s3534_s6 = inlined_call_operand.hbm [shape: bf16[128,128], index: 6, kind: input, shape index: {}]   ;;  %s3535_s7 = inlined_call_operand.vmem [shape: f32[1,128], index: 7, kind: input, shape index: {}]   ;;  %s3536_s8 = inlined_call_operand.vmem [shape: bf16[128,1], index: 8, kind: input, shape index: {}]   ;;  %s3537_s9 = inlined_call_operand.vmem [shape: bf16[128,3], index: 9, kind: input, shape index: {}]   ;;  %s3538_s10 = inlined_call_operand.vmem [shape: f32[1,3], index: 10, kind: input, shape index: {}]   ;;  %s3539_s11 = inlined_call_operand.vmem [shape: f32[1,3], index: 11, kind: input, shape index: {}]   ;;  %s3540_s12 = inlined_call_operand.vmem [shape: f32[1,3], index: 12, kind: input, shape index: {}]   ;;  %s3541_s13 = inlined_call_operand.vmem [shape: f32[8,3], index: 13, kind: output, shape index: {}]  }
   0x1   :  { %19 = vsyncpa [#allocation6], 0  ;;  %s2679_s25 = smov [#allocation3]   ;;  %s2631_s29 = scalar_lea.hbm %s3533_s5, 1024 }
   0x2   :  { %s35_s26 = sshll.u32 %s2679_s25, 4  ;;  %p2632_p0 = scmp.ne.s32.totalorder %s3533_s5, %s2631_s29  ;;  %s36_s26 = int_to_ptr.vmem [resolvable:$true] %s35_s26 }
   0x3   :  { %p2635_p1 = scmp.lt.u32.totalorder %s2631_s29, %s3533_s5 }
   0x5   :  { %p2637_p2 = pnand %p2635_p1, %p2632_p0 }
   0x7   :  { %2640 = shalt.err (!%p2637_p2)
}
   0x8   :  { %s2641_s17 = scalar_lea.vmem %s36_s26, 1024  ;;  %p2646_p4 = scmp.lt.s32.totalorder %s36_s26, %s36_s26 }
   0x9   :  { %p2642_p3 = scmp.ne.s32.totalorder %s36_s26, %s2641_s17  ;;  %p2647_p5 = scmp.lt.s32.totalorder %s2641_s17, %s2641_s17 }
   0xb   :  { %p2648_p6 = por %p2647_p5, %p2646_p4 }
   0xd   :  { %p2649_p7 = pnand %p2648_p6, %p2642_p3 }
   0xf   :  { %2652 = shalt.err (!%p2649_p7)
}
  0x10   :  { %s2680_s18 = smov 64   ;;  %s2681_s19 = smov 4  }
  0x11   :  { %41 = dma.hbm_to_vmem [thread:$0]  %s3533_s5, 1024, %s36_s26, [#allocation4], %s2680_s18, %s2680_s18, %s2681_s19  }
  0x12   :  { %s2682_s22 = smov [#allocation5]   ;;  %s2653_s27 = scalar_lea.hbm %s3534_s6, 1024 }
  0x13   :  { %s47_s23 = sshll.u32 %s2682_s22, 4  ;;  %p2654_p8 = scmp.ne.s32.totalorder %s3534_s6, %s2653_s27  ;;  %s48_s23 = int_to_ptr.vmem [resolvable:$true] %s47_s23 }
  0x14   :  { %p2657_p9 = scmp.lt.u32.totalorder %s2653_s27, %s3534_s6 }
  0x16   :  { %p2659_p10 = pnand %p2657_p9, %p2654_p8 }
  0x18   :  { %2662 = shalt.err (!%p2659_p10)
}
  0x19   :  { %s2663_s15 = scalar_lea.vmem %s48_s23, 1024  ;;  %p2668_p12 = scmp.lt.s32.totalorder %s48_s23, %s48_s23 }
  0x1a   :  { %p2664_p11 = scmp.ne.s32.totalorder %s48_s23, %s2663_s15  ;;  %p2669_p13 = scmp.lt.s32.totalorder %s2663_s15, %s2663_s15 }
  0x1c   :  { %p2670_p0 = por %p2669_p13, %p2668_p12 }
  0x1e   :  { %p2671_p1 = pnand %p2670_p0, %p2664_p11 }
  0x20   :  { %2674 = shalt.err (!%p2671_p1)
}
  0x21   :  { %53 = dma.hbm_to_vmem [thread:$0]  %s3534_s6, 1024, %s48_s23, [#allocation6], %s2680_s18, %s2680_s18, %s2681_s19  }
  0x22   :  { %2675 = dma.done.wait [#allocation4], 1024  }
  0x23   :  { %2676 = vsyncadd [#allocation4], 4294966272 }
  0x24   :  { %2677 = dma.done.wait [#allocation6], 1024  }
  0x25   :  { %2678 = vsyncadd [#allocation6], 4294966272  ;;  %v84_v0 = vlaneseq  ;;  %v2683_v1 = vmov 1983009808   ;;  %v3542_v3 = vmov 0   ;;  %vm149_vm0 = vcmask 1041408  }
  0x26   :  { %v122_v2 = vunpack.c.l.s4 %v2683_v1  ;;  %191 = vmatprep.mubr.bf16.mxu0 %v3542_v3  ;;  %2419 = vset.pattern.permute.xlu1 %v3542_v3  ;;  %v81_v7 = vld [vmem:[%s3529_s1] sm:$0x3f]  ;;  %vm136_vm1 = vcmask 31744   ;;  %v2808_v17 = vld [vmem:[%s3530_s2 + $0x1c] ss:$12 sps:$4 sm:$0xff]   ;;  %v3544_v19 = vmov 0.0  }
  0x27   :  { %v2783_v4 = vshrl.u32 %v84_v0, 7  ;;  %2418 = vset.pattern.permute.xlu0 %v3542_v3  ;;  %v2420_v9 = vld [vmem:[%s3528_s0] sm:$0xff]   ;;  %v120_v10 = vcombine.high %v81_v7, %v81_v7  ;;  %v2427_v20 = vld [vmem:[%s3528_s0 + $0x8] sm:$0xff]   ;;  %v2434_v21 = vld [vmem:[%s3528_s0 + $0x10] sm:$0xff]   ;;  %vm2686_vm2 = vmmov 0   ;;  %vm1933_vm3 = vcmask 23552  }
  0x28   :  { %v123_v5 = vunpack.c.0.s8 %v122_v2  ;;  %v2796_v13 = vld [vmem:[%s3530_s2 + $0x4] ss:$12 sps:$4 sm:$0xff]   ;;  %2153 = vmatprep.mubr.msk.bf16.mxu1 %vm136_vm1, %v2420_v9  ;;  %v2802_v15 = vld [vmem:[%s3530_s2] ss:$12 sps:$4 sm:$0xff]   ;;  %v2842_v24 = vld [vmem:[%s3530_s2 + $0x8] ss:$12 sps:$4 sm:$0xff]  }
  0x29   :  { %v2813_v18 = vld [vmem:[%s3530_s2 + $0x18] ss:$12 sps:$4 sm:$0xff]   ;;  %v2829_v22 = vld [vmem:[%s3530_s2 + $0x34] ss:$12 sps:$4 sm:$0xff]   ;;  %v2836_v23 = vld [vmem:[%s3530_s2 + $0x30] ss:$12 sps:$4 sm:$0xff]  }
  0x2a   :  { %v126_v6 = vsub.s32 %v123_v5, %v2783_v4  ;;  %v2848_v25 = vld [vmem:[%s3530_s2 + $0x4c] ss:$12 sps:$4 sm:$0xff]   ;;  %v2865_v28 = vld [vmem:[%s3530_s2 + $0x48] ss:$12 sps:$4 sm:$0xff]   ;;  %v2872_v29 = vld [vmem:[%s3530_s2 + $0x64] ss:$12 sps:$4 sm:$0xff]  }
  0x2b   :  { %v2442_v26 = vld [vmem:[%s3528_s0 + $0x18] sm:$0xff]   ;;  %v2859_v27 = vld [vmem:[%s3530_s2 + $0x20] ss:$12 sps:$4 sm:$0xff]   ;;  %v2919_v36 = vld [vmem:[%s3530_s2 + $0x68] ss:$12 sps:$4 sm:$0xff]   ;;  %v86_v43 = vsub.s32 0, %v2783_v4 }
  0x2c   :  { %v127_v8 = vrot.slane %v81_v7, %v126_v6  ;;  %v134_v14 = vrot.slane %v120_v10, %v126_v6  ;;  %v2879_v30 = vld [vmem:[%s3530_s2 + $0x38] ss:$12 sps:$4 sm:$0xff]   ;;  %v2886_v31 = vld [vmem:[%s3530_s2 + $0x60] ss:$12 sps:$4 sm:$0xff]   ;;  %v2893_v32 = vld [vmem:[%s3530_s2 + $0x7c] ss:$12 sps:$4 sm:$0xff]  }
  0x2d   :  { %v2899_v33 = vld [vmem:[%s3530_s2 + $0x50] ss:$12 sps:$4 sm:$0xff]   ;;  %v2904_v34 = vld [vmem:[%s3530_s2 + $0x78] ss:$12 sps:$4 sm:$0xff]   ;;  %v2911_v35 = vld [vmem:[%s3530_s2 + $0x94] ss:$12 sps:$4 sm:$0xff]  }
  0x2e   :  { %v135_v11 = vcombine.high %v127_v8, %v127_v8  ;;  %v151_v12 = vsel %vm149_vm0, %v127_v8, 0  ;;  %2409 = vmatprep.subr.msk.bf16.mxu1 %vm149_vm0, %v134_v14  ;;  %v157_v16 = vsel %vm149_vm0, %v134_v14, 0  ;;  %v2925_v37 = vld [vmem:[%s3530_s2 + $0x90] ss:$12 sps:$4 sm:$0xff]   ;;  %v2931_v38 = vld [vmem:[%s3530_s2 + $0xac] ss:$12 sps:$4 sm:$0xff]  }
  0x2f   :  { %2152 = vmatpush3.bf16.msra.mxu1 %v157_v16  ;;  %v2938_v39 = vld [vmem:[%s3530_s2 + $0x80] ss:$12 sps:$4 sm:$0xff]   ;;  %v2944_v40 = vld [vmem:[%s3530_s2 + $0xa8] ss:$12 sps:$4 sm:$0xff]   ;;  %v2954_v41 = vld [vmem:[%s3530_s2 + $0x98] ss:$12 sps:$4 sm:$0xff]  }
  0x30   :  { %1945 = vmatprep.subr.msk.bf16.mxu0 %vm149_vm0, %v135_v11  ;;  %2161 = vmatprep.subr.bf16.mxu1 %v3544_v19  ;;  %v2963_v42 = vld [vmem:[%s3530_s2 + $0xb0] ss:$12 sps:$4 sm:$0xff]   ;;  %v82_v44 = vld [vmem:[%s3531_s3] sm:$0x7]  ;;  %v90_v45 = vsub.s32 1, %v2783_v4  ;;  %v94_v46 = vsub.s32 2, %v2783_v4 }
  0x31   :  { %160 = vmatpush1.bf16.msra.mxu0 %v151_v12  ;;  %v87_v47 = vrot.slane %v82_v44, %v86_v43 }
  0x32   :  { %458 = vmatprep.subr.bf16.mxu0 %v2796_v13  ;;  %2154 = vmatmul.mubr.msk.bf16.vlgmr.msra.gmra.mrb[0].mxu1 %vm136_vm1, %v2427_v20  ;;  %v91_v48 = vrot.slane %v82_v44, %v90_v45  ;;  %v95_v49 = vrot.slane %v82_v44, %v94_v46 }
  0x33   :  { %2157 = vmatprep.mubr.msk.bf16.mxu1 %vm136_vm1, %v2434_v21  ;;  %2162 = vmatpush3.bf16.msra.mxu1 %v2842_v24 }
  0x34   :  { %1946 = vmatmul.mubr.msk.bf16.vlgmr.msra.gmra.mrb[0].mxu0 %vm136_vm1, %v2420_v9  ;;  %2163 = vmatprep.subr.bf16.mxu1 %v3544_v19 }
  0x35   :  { %459 = vmatpush1.bf16.msra.mxu0 %v2802_v15  ;;  %201 = vmatprep.mubr.bf16.mxu0 %v3542_v3 }
  0x36   :  { %460 = vmatprep.subr.bf16.mxu0 %v2808_v17 }
  0x37   :  { %2164 = vmatpush3.bf16.msra.mxu1 %v2859_v27 }
  0x38   :  { %2165 = vmatprep.subr.bf16.mxu1 %v3544_v19 }
  0x39   :  { %461 = vmatpush1.bf16.msra.mxu0 %v2813_v18 }
  0x3a   :  { %462 = vmatprep.subr.bf16.mxu0 %v2829_v22  ;;  %2158 = vmatmul.mubr.msk.bf16.gmra.mrb[4].mxu1 %vm136_vm1, %v2442_v26 }
  0x3b   :  { %2177 = vmatprep.mubr.msk.bf16.mxu1 %vm2686_vm2, %v3544_v19  ;;  %2166 = vmatpush3.bf16.msra.mxu1 %v2879_v30 }
  0x3c   :  { %1947 = vmatmul.mubr.msk.bf16.gmra.mrb[4].mxu0 %vm136_vm1, %v2427_v20  ;;  %2167 = vmatprep.subr.bf16.mxu1 %v3544_v19 }
  0x3d   :  { %463 = vmatpush1.bf16.msra.mxu0 %v2836_v23  ;;  %211 = vmatprep.mubr.bf16.mxu0 %v3542_v3 }
  0x3e   :  { %464 = vmatprep.subr.bf16.mxu0 %v2848_v25 }
  0x3f   :  { %2168 = vmatpush3.bf16.msra.mxu1 %v2899_v33 }
  0x40   :  { %2169 = vmatprep.subr.bf16.mxu1 %v3544_v19 }
  0x41   :  { %465 = vmatpush1.bf16.msra.mxu0 %v2865_v28 }
  0x42   :  { %466 = vmatprep.subr.bf16.mxu0 %v2872_v29 }
  0x43   :  { %2170 = vmatpush3.bf16.msra.mxu1 %v2919_v36 }
  0x44   :  { %1948 = vmatmul.mubr.msk.bf16.gmra.mrb[8].mxu0 %vm136_vm1, %v2434_v21  ;;  %2171 = vmatprep.subr.bf16.mxu1 %v3544_v19 }
  0x45   :  { %467 = vmatpush1.bf16.msra.mxu0 %v2886_v31  ;;  %221 = vmatprep.mubr.bf16.mxu0 %v3542_v3 }
  0x46   :  { %468 = vmatprep.subr.bf16.mxu0 %v2893_v32 }
  0x47   :  { %2172 = vmatpush3.bf16.msra.mxu1 %v2938_v39 }
  0x48   :  { %2173 = vmatprep.subr.bf16.mxu1 %v3544_v19 }
  0x49   :  { %469 = vmatpush1.bf16.msra.mxu0 %v2904_v34 }
  0x4a   :  { %470 = vmatprep.subr.bf16.mxu0 %v2911_v35 }
  0x4b   :  { %2174 = vmatpush3.bf16.msra.mxu1 %v2954_v41 }
  0x4c   :  { %1949 = vmatmul.mubr.msk.bf16.gmra.mrb[12].mxu0 %vm136_vm1, %v2442_v26  ;;  %2175 = vmatprep.subr.bf16.mxu1 %v3544_v19 }
  0x4d   :  { %471 = vmatpush1.bf16.msra.mxu0 %v2925_v37  ;;  %490 = vmatprep.mubr.bf16.mxu0 %v3542_v3 }
  0x4e   :  { %472 = vmatprep.subr.bf16.mxu0 %v2931_v38 }
  0x4f   :  { %2176 = vmatpush3.bf16.msra.mxu1 %v2963_v42 }
  0x50   :  { %2181 = vmatprep.subr.bf16.mxu1 %v3544_v19 }
  0x51   :  { %473 = vmatpush1.bf16.msra.mxu0 %v2944_v40 }
  0x52   :  { %569 = vmatprep.subr.bf16.mxu0 %v2796_v13  ;;  %2178 = vmatmul.mubr.bf16.vlgmr.msra.gmra.mrb[8].mxu1 %v3542_v3 }
  0x53   :  { %2182 = vmatpush3.bf16.msra.mxu1 %v2842_v24  ;;  %2197 = vmatprep.mubr.msk.bf16.mxu1 %vm2686_vm2, %v3544_v19 }
  0x54   :  { %491 = vmatmul.mubr.bf16.vlgmr.msra.gmra.mrb[16].mxu0 %v3542_v3  ;;  %2183 = vmatprep.subr.bf16.mxu1 %v3544_v19 }
  0x55   :  { %570 = vmatpush1.bf16.msra.mxu0 %v2802_v15  ;;  %601 = vmatprep.mubr.bf16.mxu0 %v3542_v3 }
  0x56   :  { %571 = vmatprep.subr.bf16.mxu0 %v2808_v17 }
  0x57   :  { %2184 = vmatpush3.bf16.msra.mxu1 %v2859_v27 }
  0x58   :  { %2185 = vmatprep.subr.bf16.mxu1 %v3544_v19 }
  0x59   :  { %572 = vmatpush1.bf16.msra.mxu0 %v2813_v18 }
  0x5a   :  { %573 = vmatprep.subr.bf16.mxu0 %v2829_v22 }
  0x5b   :  { %2186 = vmatpush3.bf16.msra.mxu1 %v2879_v30 }
  0x5c   :  { %2187 = vmatprep.subr.bf16.mxu1 %v3544_v19 }
  0x5d   :  { %574 = vmatpush1.bf16.msra.mxu0 %v2836_v23 }
  0x5e   :  { %575 = vmatprep.subr.bf16.mxu0 %v2848_v25 }
  0x5f   :  { %2188 = vmatpush3.bf16.msra.mxu1 %v2899_v33 }
  0x60   :  { %2189 = vmatprep.subr.bf16.mxu1 %v3544_v19 }
  0x61   :  { %576 = vmatpush1.bf16.msra.mxu0 %v2865_v28 }
  0x62   :  { %577 = vmatprep.subr.bf16.mxu0 %v2872_v29 }
  0x63   :  { %2190 = vmatpush3.bf16.msra.mxu1 %v2919_v36 }
  0x64   :  { %2191 = vmatprep.subr.bf16.mxu1 %v3544_v19 }
  0x65   :  { %578 = vmatpush1.bf16.msra.mxu0 %v2886_v31 }
  0x66   :  { %579 = vmatprep.subr.bf16.mxu0 %v2893_v32 }
  0x67   :  { %2192 = vmatpush3.bf16.msra.mxu1 %v2938_v39 }
  0x68   :  { %2193 = vmatprep.subr.bf16.mxu1 %v3544_v19 }
  0x69   :  { %580 = vmatpush1.bf16.msra.mxu0 %v2904_v34 }
  0x6a   :  { %581 = vmatprep.subr.bf16.mxu0 %v2911_v35 }
  0x6b   :  { %2194 = vmatpush3.bf16.msra.mxu1 %v2954_v41 }
  0x6c   :  { %2195 = vmatprep.subr.bf16.mxu1 %v3544_v19 }
  0x6d   :  { %582 = vmatpush1.bf16.msra.mxu0 %v2925_v37 }
  0x6e   :  { %583 = vmatprep.subr.bf16.mxu0 %v2931_v38 }
  0x6f   :  { %2196 = vmatpush3.bf16.msra.mxu1 %v2963_v42 }
  0x70   :  { %2201 = vmatprep.subr.bf16.mxu1 %v3544_v19 }
  0x71   :  { %584 = vmatpush1.bf16.msra.mxu0 %v2944_v40 }
  0x72   :  { %674 = vmatprep.subr.bf16.mxu0 %v2796_v13 }
 0x105   :  { %v2155_v55 = vpop.f32.mrb[0].mxu1 }
 0x106   :  { %v3015_v58 = vadd.f32 %v2155_v55, %v95_v49  ;;  %v266_v59 = vpop.f32.mrb[1].mxu1 }
 0x107   :  { %v193_v50 = vpop.f32.mrb[0].mxu0  ;;  %v267_v61 = vadd.f32 %v266_v59, %v95_v49  ;;  %v2156_v62 = vpop.f32.mrb[2].mxu1 }
 0x108   :  { %v194_v51 = vadd.f32 %v193_v50, %v87_v47  ;;  %v195_v52 = vpop.f32.mrb[1].mxu0  ;;  %v3019_v63 = vadd.f32 %v2156_v62, %v95_v49  ;;  %v269_v0 = vpop.f32.mrb[3].mxu1 }
 0x109   :  { %v196_v53 = vadd.f32 %v195_v52, %v91_v48  ;;  %v197_v54 = vpop.f32.mrb[2].mxu0  ;;  %v3021_v1 = vadd.f32 %v269_v0, %v95_v49 }
 0x10a   :  { %v3013_v56 = vadd.f32 %v197_v54, %v87_v47  ;;  %v199_v57 = vpop.f32.mrb[3].mxu0 }
 0x10b   :  { %v3017_v60 = vadd.f32 %v199_v57, %v91_v48 }
 0x10d   :  { %v2159_v8 = vpop.f32.mrb[4].mxu1 }
 0x10e   :  { %v3029_v11 = vadd.f32 %v2159_v8, %v95_v49  ;;  %v282_v12 = vpop.f32.mrb[5].mxu1 }
 0x10f   :  { %v203_v2 = vpop.f32.mrb[4].mxu0  ;;  %v3033_v16 = vadd.f32 %v282_v12, %v95_v49  ;;  %v2160_v20 = vpop.f32.mrb[6].mxu1 }
 0x110   :  { %v3023_v4 = vadd.f32 %v203_v2, %v87_v47  ;;  %v205_v5 = vpop.f32.mrb[5].mxu0  ;;  %v3035_v21 = vadd.f32 %v2160_v20, %v95_v49  ;;  %v285_v26 = vpop.f32.mrb[7].mxu1 }
 0x111   :  { %v3025_v6 = vadd.f32 %v205_v5, %v91_v48  ;;  %v207_v7 = vpop.f32.mrb[6].mxu0  ;;  %v3037_v43 = vadd.f32 %v285_v26, %v95_v49 }
 0x112   :  { %v3027_v9 = vadd.f32 %v207_v7, %v87_v47  ;;  %v209_v10 = vpop.f32.mrb[7].mxu0  ;;  %3546 = vst [vmem:[#allocation9_spill] sm:$0xff] %v3035_v21 }
 0x113   :  { %v3031_v14 = vadd.f32 %v209_v10, %v91_v48 }
 0x117   :  { %v213_v44 = vpop.f32.mrb[8].mxu0 }
 0x118   :  { %v3039_v45 = vadd.f32 %v213_v44, %v87_v47  ;;  %v215_v46 = vpop.f32.mrb[9].mxu0 }
 0x119   :  { %v3041_v50 = vadd.f32 %v215_v46, %v91_v48  ;;  %v217_v52 = vpop.f32.mrb[10].mxu0 }
 0x11a   :  { %v3043_v54 = vadd.f32 %v217_v52, %v87_v47  ;;  %v219_v55 = vpop.f32.mrb[11].mxu0 }
 0x11b   :  { %v3045_v57 = vadd.f32 %v219_v55, %v91_v48 }
 0x11f   :  { %v223_v59 = vpop.f32.mrb[12].mxu0 }
 0x120   :  { %v3047_v62 = vadd.f32 %v223_v59, %v87_v47  ;;  %v225_v0 = vpop.f32.mrb[13].mxu0 }
 0x121   :  { %v3049_v2 = vadd.f32 %v225_v0, %v91_v48  ;;  %v227_v49 = vpop.f32.mrb[14].mxu0 }
 0x122   :  { %v3051_v5 = vadd.f32 %v227_v49, %v87_v47  ;;  %v229_v7 = vpop.f32.mrb[15].mxu0 }
 0x123   :  { %v3053_v8 = vadd.f32 %v229_v7, %v91_v48  ;;  %v3058_v48 = vld [vmem:[%s3532_s4] ss:$0 sm:$0xff] }
 0x125   :  { %3547 = vst [vmem:[#allocation10_spill] sm:$0xff] %v3053_v8  ;;  %v533_v55 = vpop.f32.mrb[8].mxu1 }
 0x126   :  { %v2179_v59 = vpop.f32.mrb[9].mxu1 }
 0x127   :  { %v492_v10 = vpop.f32.mrb[16].mxu0  ;;  %v536_v19 = vpop.f32.mrb[10].mxu1 }
 0x128   :  { %v539_v12 = vadd.f32 %v492_v10, %v194_v51  ;;  %v494_v20 = vpop.f32.mrb[17].mxu0  ;;  %v2180_v0 = vpop.f32.mrb[11].mxu1 }
 0x129   :  { %v546_v26 = vadd.f32 %v494_v20, %v196_v53  ;;  %v496_v44 = vpop.f32.mrb[18].mxu0  ;;  %v559_v53 = vadd.f32 %v3058_v48, %v533_v55 }
 0x12a   :  { %v1978_v46 = vmul.f32 -1.442695, %v539_v12  ;;  %v497_v52 = vpop.f32.mrb[19].mxu0 }
 0x12b   :  { %v1979_v3 = vmul.f32 -1.442695, %v546_v26  ;;  %v3549_v52 = vmov 0  }
 0x12c   :  { %2489 = vpow2.f32 %v1978_v46 }
 0x12d   :  { %2491 = vpow2.f32 %v1979_v3 }
 0x136   :  { %v2490_v21 = vpop.eup %2489 }
 0x137   :  { %v543_v47 = vadd.f32 1.0, %v2490_v21  ;;  %v2492_v49 = vpop.eup %2491 }
 0x138   :  { %v550_v51 = vadd.f32 1.0, %v2492_v49 }
 0x139   :  { %2493 = vrcp.f32 %v543_v47 }
 0x13a   :  { %2495 = vrcp.f32 %v550_v51 }
 0x143   :  { %v2494_v7 = vpop.eup %2493 }
 0x144   :  { %v560_v10 = vmul.f32 %v2494_v7, %v559_v53  ;;  %v2496_v19 = vpop.eup %2495 }
 0x145   :  { %v563_v20 = vsub.f32 1.0, %v2496_v19  ;;  %v565_v26 = vmul.f32 0.0, %v2496_v19 }
 0x146   :  { %v561_v12 = vadd.f32 %v560_v10, %v267_v61  ;;  %v3548_v61 = vmov 0.0  }
 0x148   :  { %2497 = vtanh.f32 %v561_v12 }
 0x152   :  { %v2498_v3 = vpop.eup %2497 }
 0x153   :  { %v564_v21 = vmul.f32 %v2498_v3, %v563_v20 }
 0x155   :  { %v3061_v44 = vadd.f32 %v565_v26, %v564_v21 }
 0x157   :  { %v568_v46 = vpack.c.bf16 %v3061_v44, %v3061_v44 }
 0x159   :  { %602 = vmatmul.mubr.bf16.vlgmr.msra.gmra.mrb[20].mxu0 %v568_v46  ;;  %2198 = vmatmul.mubr.bf16.vlgmr.msra.gmra.mrb[12].mxu1 %v568_v46 }
 0x15a   :  { %675 = vmatpush1.bf16.msra.mxu0 %v2802_v15  ;;  %2202 = vmatpush3.bf16.msra.mxu1 %v2842_v24 }
 0x15b   :  { %676 = vmatprep.subr.bf16.mxu0 %v2808_v17  ;;  %2203 = vmatprep.subr.bf16.mxu1 %v3548_v61 }
 0x15c   :  { %706 = vmatprep.mubr.bf16.mxu0 %v3549_v52  ;;  %2217 = vmatprep.mubr.msk.bf16.mxu1 %vm2686_vm2, %v3548_v61 }
 0x15e   :  { %677 = vmatpush1.bf16.msra.mxu0 %v2813_v18  ;;  %2204 = vmatpush3.bf16.msra.mxu1 %v2859_v27 }
 0x15f   :  { %678 = vmatprep.subr.bf16.mxu0 %v2829_v22  ;;  %2205 = vmatprep.subr.bf16.mxu1 %v3548_v61 }
 0x162   :  { %679 = vmatpush1.bf16.msra.mxu0 %v2836_v23  ;;  %2206 = vmatpush3.bf16.msra.mxu1 %v2879_v30 }
 0x163   :  { %680 = vmatprep.subr.bf16.mxu0 %v2848_v25  ;;  %2207 = vmatprep.subr.bf16.mxu1 %v3548_v61 }
 0x166   :  { %681 = vmatpush1.bf16.msra.mxu0 %v2865_v28  ;;  %2208 = vmatpush3.bf16.msra.mxu1 %v2899_v33 }
 0x167   :  { %682 = vmatprep.subr.bf16.mxu0 %v2872_v29  ;;  %2209 = vmatprep.subr.bf16.mxu1 %v3548_v61 }
 0x16a   :  { %683 = vmatpush1.bf16.msra.mxu0 %v2886_v31  ;;  %2210 = vmatpush3.bf16.msra.mxu1 %v2919_v36 }
 0x16b   :  { %684 = vmatprep.subr.bf16.mxu0 %v2893_v32  ;;  %2211 = vmatprep.subr.bf16.mxu1 %v3548_v61 }
 0x16e   :  { %685 = vmatpush1.bf16.msra.mxu0 %v2904_v34  ;;  %2212 = vmatpush3.bf16.msra.mxu1 %v2938_v39 }
 0x16f   :  { %686 = vmatprep.subr.bf16.mxu0 %v2911_v35  ;;  %2213 = vmatprep.subr.bf16.mxu1 %v3548_v61 }
 0x172   :  { %687 = vmatpush1.bf16.msra.mxu0 %v2925_v37  ;;  %2214 = vmatpush3.bf16.msra.mxu1 %v2954_v41 }
 0x173   :  { %688 = vmatprep.subr.bf16.mxu0 %v2931_v38  ;;  %2215 = vmatprep.subr.bf16.mxu1 %v3548_v61 }
 0x176   :  { %689 = vmatpush1.bf16.msra.mxu0 %v2944_v40  ;;  %2216 = vmatpush3.bf16.msra.mxu1 %v2963_v42 }
 0x177   :  { %779 = vmatprep.subr.bf16.mxu0 %v2796_v13  ;;  %2221 = vmatprep.subr.bf16.mxu1 %v3548_v61 }
 0x22c   :  { %v603_v55 = vpop.f32.mrb[20].mxu0  ;;  %v644_v59 = vpop.f32.mrb[12].mxu1 }
 0x22d   :  { %v650_v0 = vadd.f32 %v603_v55, %v3013_v56  ;;  %v605_v47 = vpop.f32.mrb[21].mxu0  ;;  %v2199_v49 = vpop.f32.mrb[13].mxu1  ;;  %v664_v8 = vadd.f32 %v3058_v48, %v644_v59 }
 0x22e   :  { %v657_v51 = vadd.f32 %v605_v47, %v3017_v60  ;;  %v607_v53 = vpop.f32.mrb[22].mxu0  ;;  %v647_v7 = vpop.f32.mrb[14].mxu1 }
 0x22f   :  { %v1981_v10 = vmul.f32 -1.442695, %v650_v0  ;;  %v608_v12 = vpop.f32.mrb[23].mxu0  ;;  %v2200_v19 = vpop.f32.mrb[15].mxu1 }
 0x230   :  { %v1982_v20 = vmul.f32 -1.442695, %v657_v51 }
 0x231   :  { %2499 = vpow2.f32 %v1981_v10 }
 0x232   :  { %2501 = vpow2.f32 %v1982_v20 }
 0x23b   :  { %v2500_v3 = vpop.eup %2499 }
 0x23c   :  { %v654_v26 = vadd.f32 1.0, %v2500_v3  ;;  %v2502_v21 = vpop.eup %2501 }
 0x23d   :  { %v661_v46 = vadd.f32 1.0, %v2502_v21 }
 0x23e   :  { %2503 = vrcp.f32 %v654_v26 }
 0x23f   :  { %2505 = vrcp.f32 %v661_v46 }
 0x248   :  { %v2504_v56 = vpop.eup %2503 }
 0x249   :  { %v665_v55 = vmul.f32 %v2504_v56, %v664_v8  ;;  %v2506_v47 = vpop.eup %2505 }
 0x24a   :  { %v668_v0 = vsub.f32 1.0, %v2506_v47  ;;  %v670_v53 = vmul.f32 %v2506_v47, %v3061_v44 }
 0x24b   :  { %v666_v60 = vadd.f32 %v665_v55, %v3021_v1 }
 0x24d   :  { %2507 = vtanh.f32 %v666_v60 }
 0x257   :  { %v2508_v49 = vpop.eup %2507 }
 0x258   :  { %v669_v51 = vmul.f32 %v2508_v49, %v668_v0 }
 0x25a   :  { %v3105_v7 = vadd.f32 %v670_v53, %v669_v51 }
 0x25c   :  { %v673_v10 = vpack.c.bf16 %v3105_v7, %v3105_v7 }
 0x25e   :  { %707 = vmatmul.mubr.bf16.vlgmr.msra.gmra.mrb[24].mxu0 %v673_v10  ;;  %2218 = vmatmul.mubr.bf16.vlgmr.msra.gmra.mrb[16].mxu1 %v673_v10 }
 0x25f   :  { %780 = vmatpush1.bf16.msra.mxu0 %v2802_v15  ;;  %2222 = vmatpush3.bf16.msra.mxu1 %v2842_v24 }
 0x260   :  { %781 = vmatprep.subr.bf16.mxu0 %v2808_v17  ;;  %2223 = vmatprep.subr.bf16.mxu1 %v3548_v61 }
 0x261   :  { %811 = vmatprep.mubr.bf16.mxu0 %v3549_v52  ;;  %2237 = vmatprep.mubr.msk.bf16.mxu1 %vm2686_vm2, %v3548_v61 }
 0x263   :  { %782 = vmatpush1.bf16.msra.mxu0 %v2813_v18  ;;  %2224 = vmatpush3.bf16.msra.mxu1 %v2859_v27 }
 0x264   :  { %783 = vmatprep.subr.bf16.mxu0 %v2829_v22  ;;  %2225 = vmatprep.subr.bf16.mxu1 %v3548_v61 }
 0x267   :  { %784 = vmatpush1.bf16.msra.mxu0 %v2836_v23  ;;  %2226 = vmatpush3.bf16.msra.mxu1 %v2879_v30 }
 0x268   :  { %785 = vmatprep.subr.bf16.mxu0 %v2848_v25  ;;  %2227 = vmatprep.subr.bf16.mxu1 %v3548_v61 }
 0x26b   :  { %786 = vmatpush1.bf16.msra.mxu0 %v2865_v28  ;;  %2228 = vmatpush3.bf16.msra.mxu1 %v2899_v33 }
 0x26c   :  { %787 = vmatprep.subr.bf16.mxu0 %v2872_v29  ;;  %2229 = vmatprep.subr.bf16.mxu1 %v3548_v61 }
 0x26f   :  { %788 = vmatpush1.bf16.msra.mxu0 %v2886_v31  ;;  %2230 = vmatpush3.bf16.msra.mxu1 %v2919_v36 }
 0x270   :  { %789 = vmatprep.subr.bf16.mxu0 %v2893_v32  ;;  %2231 = vmatprep.subr.bf16.mxu1 %v3548_v61 }
 0x273   :  { %790 = vmatpush1.bf16.msra.mxu0 %v2904_v34  ;;  %2232 = vmatpush3.bf16.msra.mxu1 %v2938_v39 }
 0x274   :  { %791 = vmatprep.subr.bf16.mxu0 %v2911_v35  ;;  %2233 = vmatprep.subr.bf16.mxu1 %v3548_v61 }
 0x277   :  { %792 = vmatpush1.bf16.msra.mxu0 %v2925_v37  ;;  %2234 = vmatpush3.bf16.msra.mxu1 %v2954_v41 }
 0x278   :  { %793 = vmatprep.subr.bf16.mxu0 %v2931_v38  ;;  %2235 = vmatprep.subr.bf16.mxu1 %v3548_v61 }
 0x27b   :  { %794 = vmatpush1.bf16.msra.mxu0 %v2944_v40  ;;  %2236 = vmatpush3.bf16.msra.mxu1 %v2963_v42 }
 0x27c   :  { %884 = vmatprep.subr.bf16.mxu0 %v2796_v13  ;;  %2241 = vmatprep.subr.bf16.mxu1 %v3548_v61 }
 0x331   :  { %v708_v1 = vpop.f32.mrb[24].mxu0  ;;  %v749_v8 = vpop.f32.mrb[16].mxu1 }
 0x332   :  { %v755_v59 = vadd.f32 %v708_v1, %v3023_v4  ;;  %v710_v12 = vpop.f32.mrb[25].mxu0  ;;  %v2219_v19 = vpop.f32.mrb[17].mxu1  ;;  %v769_v53 = vadd.f32 %v3058_v48, %v749_v8 }
 0x333   :  { %v762_v20 = vadd.f32 %v710_v12, %v3025_v6  ;;  %v712_v3 = vpop.f32.mrb[26].mxu0  ;;  %v752_v26 = vpop.f32.mrb[18].mxu1 }
 0x334   :  { %v1983_v21 = vmul.f32 -1.442695, %v755_v59  ;;  %v713_v46 = vpop.f32.mrb[27].mxu0  ;;  %v2220_v56 = vpop.f32.mrb[19].mxu1 }
 0x335   :  { %v1984_v55 = vmul.f32 -1.442695, %v762_v20 }
 0x336   :  { %2509 = vpow2.f32 %v1983_v21 }
 0x337   :  { %2511 = vpow2.f32 %v1984_v55 }
 0x340   :  { %v2510_v60 = vpop.eup %2509 }
 0x341   :  { %v759_v47 = vadd.f32 1.0, %v2510_v60  ;;  %v2512_v0 = vpop.eup %2511 }
 0x342   :  { %v766_v49 = vadd.f32 1.0, %v2512_v0 }
 0x343   :  { %2513 = vrcp.f32 %v759_v47 }
 0x344   :  { %2515 = vrcp.f32 %v766_v49 }
 0x34d   :  { %v2514_v4 = vpop.eup %2513 }
 0x34e   :  { %v770_v51 = vmul.f32 %v2514_v4, %v769_v53  ;;  %v2516_v10 = vpop.eup %2515 }
 0x34f   :  { %v773_v1 = vsub.f32 1.0, %v2516_v10  ;;  %v775_v12 = vmul.f32 %v2516_v10, %v3105_v7 }
 0x350   :  { %v771_v6 = vadd.f32 %v770_v51, %v3015_v58 }
 0x352   :  { %2517 = vtanh.f32 %v771_v6 }
 0x35c   :  { %v2518_v59 = vpop.eup %2517 }
 0x35d   :  { %v774_v19 = vmul.f32 %v2518_v59, %v773_v1 }
 0x35f   :  { %v3149_v20 = vadd.f32 %v775_v12, %v774_v19 }
 0x361   :  { %v778_v3 = vpack.c.bf16 %v3149_v20, %v3149_v20 }
 0x363   :  { %812 = vmatmul.mubr.bf16.vlgmr.msra.gmra.mrb[28].mxu0 %v778_v3  ;;  %2238 = vmatmul.mubr.bf16.vlgmr.msra.gmra.mrb[20].mxu1 %v778_v3 }
 0x364   :  { %885 = vmatpush1.bf16.msra.mxu0 %v2802_v15  ;;  %2242 = vmatpush3.bf16.msra.mxu1 %v2842_v24 }
 0x365   :  { %886 = vmatprep.subr.bf16.mxu0 %v2808_v17  ;;  %2243 = vmatprep.subr.bf16.mxu1 %v3548_v61 }
 0x366   :  { %916 = vmatprep.mubr.bf16.mxu0 %v3549_v52  ;;  %2257 = vmatprep.mubr.msk.bf16.mxu1 %vm2686_vm2, %v3548_v61 }
 0x368   :  { %887 = vmatpush1.bf16.msra.mxu0 %v2813_v18  ;;  %2244 = vmatpush3.bf16.msra.mxu1 %v2859_v27 }
 0x369   :  { %888 = vmatprep.subr.bf16.mxu0 %v2829_v22  ;;  %2245 = vmatprep.subr.bf16.mxu1 %v3548_v61 }
 0x36c   :  { %889 = vmatpush1.bf16.msra.mxu0 %v2836_v23  ;;  %2246 = vmatpush3.bf16.msra.mxu1 %v2879_v30 }
 0x36d   :  { %890 = vmatprep.subr.bf16.mxu0 %v2848_v25  ;;  %2247 = vmatprep.subr.bf16.mxu1 %v3548_v61 }
 0x370   :  { %891 = vmatpush1.bf16.msra.mxu0 %v2865_v28  ;;  %2248 = vmatpush3.bf16.msra.mxu1 %v2899_v33 }
 0x371   :  { %892 = vmatprep.subr.bf16.mxu0 %v2872_v29  ;;  %2249 = vmatprep.subr.bf16.mxu1 %v3548_v61 }
 0x374   :  { %893 = vmatpush1.bf16.msra.mxu0 %v2886_v31  ;;  %2250 = vmatpush3.bf16.msra.mxu1 %v2919_v36 }
 0x375   :  { %894 = vmatprep.subr.bf16.mxu0 %v2893_v32  ;;  %2251 = vmatprep.subr.bf16.mxu1 %v3548_v61 }
 0x378   :  { %895 = vmatpush1.bf16.msra.mxu0 %v2904_v34  ;;  %2252 = vmatpush3.bf16.msra.mxu1 %v2938_v39 }
 0x379   :  { %896 = vmatprep.subr.bf16.mxu0 %v2911_v35  ;;  %2253 = vmatprep.subr.bf16.mxu1 %v3548_v61 }
 0x37c   :  { %897 = vmatpush1.bf16.msra.mxu0 %v2925_v37  ;;  %2254 = vmatpush3.bf16.msra.mxu1 %v2954_v41 }
 0x37d   :  { %898 = vmatprep.subr.bf16.mxu0 %v2931_v38  ;;  %2255 = vmatprep.subr.bf16.mxu1 %v3548_v61 }
 0x380   :  { %899 = vmatpush1.bf16.msra.mxu0 %v2944_v40  ;;  %2256 = vmatpush3.bf16.msra.mxu1 %v2963_v42 }
 0x381   :  { %989 = vmatprep.subr.bf16.mxu0 %v2796_v13  ;;  %2261 = vmatprep.subr.bf16.mxu1 %v3548_v61 }
 0x436   :  { %v813_v58 = vpop.f32.mrb[28].mxu0  ;;  %v854_v8 = vpop.f32.mrb[20].mxu1 }
 0x437   :  { %v860_v26 = vadd.f32 %v813_v58, %v3027_v9  ;;  %v815_v21 = vpop.f32.mrb[29].mxu0  ;;  %v2239_v46 = vpop.f32.mrb[21].mxu1  ;;  %v874_v10 = vadd.f32 %v3058_v48, %v854_v8 }
 0x438   :  { %v867_v56 = vadd.f32 %v815_v21, %v3031_v14  ;;  %v817_v55 = vpop.f32.mrb[30].mxu0  ;;  %v857_v60 = vpop.f32.mrb[22].mxu1 }
 0x439   :  { %v1985_v47 = vmul.f32 -1.442695, %v860_v26  ;;  %v818_v0 = vpop.f32.mrb[31].mxu0  ;;  %v2240_v49 = vpop.f32.mrb[23].mxu1 }
 0x43a   :  { %v1986_v53 = vmul.f32 -1.442695, %v867_v56 }
 0x43b   :  { %2519 = vpow2.f32 %v1985_v47 }
 0x43c   :  { %2521 = vpow2.f32 %v1986_v53 }
 0x445   :  { %v2520_v4 = vpop.eup %2519 }
 0x446   :  { %v864_v13 = vadd.f32 1.0, %v2520_v4  ;;  %v2522_v51 = vpop.eup %2521 }
 0x447   :  { %v871_v6 = vadd.f32 1.0, %v2522_v51  ;;  %v3249_v51 = vld [vmem:[%s3530_s2] ss:$12 sps:$4 sm:$0xff]  }
 0x448   :  { %2523 = vrcp.f32 %v864_v13 }
 0x449   :  { %2525 = vrcp.f32 %v871_v6  ;;  %v3261_v6 = vld [vmem:[%s3530_s2 + $0x1c] ss:$12 sps:$4 sm:$0xff]  }
 0x452   :  { %v2524_v9 = vpop.eup %2523 }
 0x453   :  { %v875_v1 = vmul.f32 %v2524_v9, %v874_v10  ;;  %v2526_v59 = vpop.eup %2525  ;;  %v3271_v10 = vld [vmem:[%s3530_s2 + $0x18] ss:$12 sps:$4 sm:$0xff]   ;;  %v3277_v9 = vld [vmem:[%s3530_s2 + $0x20] ss:$12 sps:$4 sm:$0xff]  }
 0x454   :  { %v878_v12 = vsub.f32 1.0, %v2526_v59  ;;  %v880_v3 = vmul.f32 %v2526_v59, %v3149_v20  ;;  %v3296_v59 = vld [vmem:[%s3530_s2 + $0x38] ss:$12 sps:$4 sm:$0xff]  }
 0x455   :  { %v876_v14 = vadd.f32 %v875_v1, %v3019_v63  ;;  %v3283_v1 = vld [vmem:[%s3530_s2 + $0x34] ss:$12 sps:$4 sm:$0xff]  }
 0x457   :  { %2527 = vtanh.f32 %v876_v14  ;;  %v3290_v14 = vld [vmem:[%s3530_s2 + $0x30] ss:$12 sps:$4 sm:$0xff]  }
 0x461   :  { %v2528_v19 = vpop.eup %2527 }
 0x462   :  { %v879_v58 = vmul.f32 %v2528_v19, %v878_v12  ;;  %v3302_v12 = vld [vmem:[%s3530_s2 + $0x4c] ss:$12 sps:$4 sm:$0xff]   ;;  %v3309_v19 = vld [vmem:[%s3530_s2 + $0x48] ss:$12 sps:$4 sm:$0xff]  }
 0x464   :  { %v3193_v26 = vadd.f32 %v880_v3, %v879_v58  ;;  %v3316_v3 = vld [vmem:[%s3530_s2 + $0x64] ss:$12 sps:$4 sm:$0xff]   ;;  %v3323_v58 = vld [vmem:[%s3530_s2 + $0x60] ss:$12 sps:$4 sm:$0xff]  }
 0x466   :  { %v883_v21 = vpack.c.bf16 %v3193_v26, %v3193_v26 }
 0x468   :  { %917 = vmatmul.mubr.bf16.vlgmr.msra.gmra.mrb[32].mxu0 %v883_v21  ;;  %2258 = vmatmul.mubr.bf16.vlgmr.msra.gmra.mrb[24].mxu1 %v883_v21  ;;  %v3337_v21 = vld [vmem:[%s3530_s2 + $0x78] ss:$12 sps:$4 sm:$0xff]  }
 0x469   :  { %990 = vmatpush1.bf16.msra.mxu0 %v2802_v15  ;;  %2262 = vmatpush3.bf16.msra.mxu1 %v2842_v24  ;;  %v3233_v15 = vld [vmem:[%s3530_s2 + $0x4] ss:$12 sps:$4 sm:$0xff]  }
 0x46a   :  { %991 = vmatprep.subr.bf16.mxu0 %v2808_v17  ;;  %2263 = vmatprep.subr.bf16.mxu1 %v3548_v61 }
 0x46b   :  { %1021 = vmatprep.mubr.bf16.mxu0 %v3549_v52  ;;  %2277 = vmatprep.mubr.msk.bf16.mxu1 %vm2686_vm2, %v3548_v61 }
 0x46d   :  { %992 = vmatpush1.bf16.msra.mxu0 %v2813_v18  ;;  %2264 = vmatpush3.bf16.msra.mxu1 %v2859_v27 }
 0x46e   :  { %993 = vmatprep.subr.bf16.mxu0 %v2829_v22  ;;  %2265 = vmatprep.subr.bf16.mxu1 %v3548_v61 }
 0x471   :  { %994 = vmatpush1.bf16.msra.mxu0 %v2836_v23  ;;  %2266 = vmatpush3.bf16.msra.mxu1 %v2879_v30 }
 0x472   :  { %995 = vmatprep.subr.bf16.mxu0 %v2848_v25  ;;  %2267 = vmatprep.subr.bf16.mxu1 %v3548_v61 }
 0x475   :  { %996 = vmatpush1.bf16.msra.mxu0 %v2865_v28  ;;  %2268 = vmatpush3.bf16.msra.mxu1 %v2899_v33 }
 0x476   :  { %997 = vmatprep.subr.bf16.mxu0 %v2872_v29  ;;  %2269 = vmatprep.subr.bf16.mxu1 %v3548_v61 }
 0x479   :  { %998 = vmatpush1.bf16.msra.mxu0 %v2886_v31  ;;  %2270 = vmatpush3.bf16.msra.mxu1 %v2919_v36 }
 0x47a   :  { %999 = vmatprep.subr.bf16.mxu0 %v2893_v32  ;;  %2271 = vmatprep.subr.bf16.mxu1 %v3548_v61 }
 0x47d   :  { %1000 = vmatpush1.bf16.msra.mxu0 %v2904_v34  ;;  %2272 = vmatpush3.bf16.msra.mxu1 %v2938_v39 }
 0x47e   :  { %1001 = vmatprep.subr.bf16.mxu0 %v2911_v35  ;;  %2273 = vmatprep.subr.bf16.mxu1 %v3548_v61 }
 0x481   :  { %1002 = vmatpush1.bf16.msra.mxu0 %v2925_v37  ;;  %2274 = vmatpush3.bf16.msra.mxu1 %v2954_v41 }
 0x482   :  { %1003 = vmatprep.subr.bf16.mxu0 %v2931_v38  ;;  %2275 = vmatprep.subr.bf16.mxu1 %v3548_v61 }
 0x485   :  { %1004 = vmatpush1.bf16.msra.mxu0 %v2944_v40  ;;  %2276 = vmatpush3.bf16.msra.mxu1 %v2963_v42 }
 0x486   :  { %1094 = vmatprep.subr.bf16.mxu0 %v3233_v15  ;;  %2281 = vmatprep.subr.bf16.mxu1 %v3548_v61 }
 0x53b   :  { %v918_v17 = vpop.f32.mrb[32].mxu0  ;;  %v959_v18 = vpop.f32.mrb[24].mxu1 }
 0x53c   :  { %v965_v22 = vadd.f32 %v918_v17, %v3039_v45  ;;  %v920_v23 = vpop.f32.mrb[33].mxu0  ;;  %v2259_v24 = vpop.f32.mrb[25].mxu1  ;;  %v979_v56 = vadd.f32 %v3058_v48, %v959_v18 }
 0x53d   :  { %v972_v25 = vadd.f32 %v920_v23, %v3041_v50  ;;  %v922_v27 = vpop.f32.mrb[34].mxu0  ;;  %v962_v28 = vpop.f32.mrb[26].mxu1 }
 0x53e   :  { %v1987_v29 = vmul.f32 -1.442695, %v965_v22  ;;  %v923_v30 = vpop.f32.mrb[35].mxu0  ;;  %v2260_v31 = vpop.f32.mrb[27].mxu1 }
 0x53f   :  { %v1988_v32 = vmul.f32 -1.442695, %v972_v25 }
 0x540   :  { %2529 = vpow2.f32 %v1987_v29 }
 0x541   :  { %2531 = vpow2.f32 %v1988_v32 }
 0x54a   :  { %v2530_v34 = vpop.eup %2529 }
 0x54b   :  { %v969_v63 = vadd.f32 1.0, %v2530_v34  ;;  %v2532_v8 = vpop.eup %2531 }
 0x54c   :  { %v976_v46 = vadd.f32 1.0, %v2532_v8 }
 0x54d   :  { %2533 = vrcp.f32 %v969_v63 }
 0x54e   :  { %2535 = vrcp.f32 %v976_v46 }
 0x557   :  { %v2534_v45 = vpop.eup %2533 }
 0x558   :  { %v980_v55 = vmul.f32 %v2534_v45, %v979_v56  ;;  %v2536_v60 = vpop.eup %2535  ;;  %v2624_v56 = vld [vmem:[%s3530_s2 + $0x80] ss:$12 sps:$4 sm:$0xff]  }
 0x559   :  { %v983_v47 = vsub.f32 1.0, %v2536_v60  ;;  %v985_v49 = vmul.f32 %v2536_v60, %v3193_v26  ;;  %v2625_v45 = vld [vmem:[%s3530_s2 + $0x94] ss:$12 sps:$4 sm:$0xff]   ;;  %v2628_v60 = vld [vmem:[%s3530_s2 + $0xac] ss:$12 sps:$4 sm:$0xff]  }
 0x55a   :  { %v981_v50 = vadd.f32 %v980_v55, %v3033_v16  ;;  %v3255_v16 = vld [vmem:[%s3530_s2 + $0x8] ss:$12 sps:$4 sm:$0xff]   ;;  %v2626_v55 = vld [vmem:[%s3530_s2 + $0x98] ss:$12 sps:$4 sm:$0xff]  }
 0x55c   :  { %2537 = vtanh.f32 %v981_v50  ;;  %v2627_v50 = vld [vmem:[%s3530_s2 + $0x90] ss:$12 sps:$4 sm:$0xff]  }
 0x566   :  { %v2538_v0 = vpop.eup %2537 }
 0x567   :  { %v984_v53 = vmul.f32 %v2538_v0, %v983_v47  ;;  %v2629_v47 = vld [vmem:[%s3530_s2 + $0xb0] ss:$12 sps:$4 sm:$0xff]   ;;  %v2630_v0 = vld [vmem:[%s3530_s2 + $0xa8] ss:$12 sps:$4 sm:$0xff]  }
 0x569   :  { %v3242_v4 = vadd.f32 %v985_v49, %v984_v53  ;;  %v2457_v49 = vld [vmem:[#allocation5] sm:$0xff]  }
 0x56b   :  { %v988_v13 = vpack.c.bf16 %v3242_v4, %v3242_v4 }
 0x56d   :  { %1022 = vmatmul.mubr.bf16.vlgmr.msra.gmra.mrb[36].mxu0 %v988_v13  ;;  %2278 = vmatmul.mubr.bf16.vlgmr.msra.gmra.mrb[28].mxu1 %v988_v13 }
 0x56e   :  { %1095 = vmatpush1.bf16.msra.mxu0 %v3249_v51  ;;  %2282 = vmatpush3.bf16.msra.mxu1 %v3255_v16 }
 0x56f   :  { %1096 = vmatprep.subr.bf16.mxu0 %v3261_v6  ;;  %2283 = vmatprep.subr.bf16.mxu1 %v3548_v61 }
 0x570   :  { %1126 = vmatprep.mubr.bf16.mxu0 %v3549_v52  ;;  %2297 = vmatprep.mubr.msk.bf16.mxu1 %vm2686_vm2, %v3548_v61 }
 0x572   :  { %1097 = vmatpush1.bf16.msra.mxu0 %v3271_v10  ;;  %2284 = vmatpush3.bf16.msra.mxu1 %v3277_v9 }
 0x573   :  { %1098 = vmatprep.subr.bf16.mxu0 %v3283_v1  ;;  %2285 = vmatprep.subr.bf16.mxu1 %v3548_v61 }
 0x576   :  { %1099 = vmatpush1.bf16.msra.mxu0 %v3290_v14  ;;  %2286 = vmatpush3.bf16.msra.mxu1 %v3296_v59 }
 0x577   :  { %1100 = vmatprep.subr.bf16.mxu0 %v3302_v12  ;;  %2287 = vmatprep.subr.bf16.mxu1 %v3548_v61 }
 0x57a   :  { %1101 = vmatpush1.bf16.msra.mxu0 %v3309_v19  ;;  %2288 = vmatpush3.bf16.msra.mxu1 %v2899_v33  ;;  %v3330_v33 = vld [vmem:[%s3530_s2 + $0x7c] ss:$12 sps:$4 sm:$0xff]  }
 0x57b   :  { %1102 = vmatprep.subr.bf16.mxu0 %v3316_v3  ;;  %2289 = vmatprep.subr.bf16.mxu1 %v3548_v61 }
 0x57e   :  { %1103 = vmatpush1.bf16.msra.mxu0 %v3323_v58  ;;  %2290 = vmatpush3.bf16.msra.mxu1 %v2919_v36 }
 0x57f   :  { %1104 = vmatprep.subr.bf16.mxu0 %v3330_v33  ;;  %2291 = vmatprep.subr.bf16.mxu1 %v3548_v61 }
 0x582   :  { %1105 = vmatpush1.bf16.msra.mxu0 %v3337_v21  ;;  %2292 = vmatpush3.bf16.msra.mxu1 %v2938_v39 }
 0x583   :  { %1106 = vmatprep.subr.bf16.mxu0 %v2911_v35  ;;  %2293 = vmatprep.subr.bf16.mxu1 %v3548_v61 }
 0x586   :  { %1107 = vmatpush1.bf16.msra.mxu0 %v2925_v37  ;;  %2294 = vmatpush3.bf16.msra.mxu1 %v2954_v41 }
 0x587   :  { %1108 = vmatprep.subr.bf16.mxu0 %v2931_v38  ;;  %2295 = vmatprep.subr.bf16.mxu1 %v3548_v61 }
 0x58a   :  { %1109 = vmatpush1.bf16.msra.mxu0 %v2944_v40  ;;  %2296 = vmatpush3.bf16.msra.mxu1 %v2963_v42 }
 0x58b   :  { %2301 = vmatprep.subr.bf16.mxu1 %v3548_v61  ;;  %1199 = vmatprep.subr.bf16.mxu0 %v3233_v15 }
 0x640   :  { %v1023_v36 = vpop.f32.mrb[36].mxu0  ;;  %v1064_v35 = vpop.f32.mrb[28].mxu1 }
 0x641   :  { %v1070_v39 = vadd.f32 %v1023_v36, %v3043_v54  ;;  %v1025_v17 = vpop.f32.mrb[37].mxu0  ;;  %v2279_v37 = vpop.f32.mrb[29].mxu1  ;;  %v1084_v28 = vadd.f32 %v3058_v48, %v1064_v35 }
 0x642   :  { %v1077_v41 = vadd.f32 %v1025_v17, %v3045_v57  ;;  %v1027_v18 = vpop.f32.mrb[38].mxu0  ;;  %v1067_v38 = vpop.f32.mrb[30].mxu1 }
 0x643   :  { %v1989_v22 = vmul.f32 -1.442695, %v1070_v39  ;;  %v1028_v23 = vpop.f32.mrb[39].mxu0  ;;  %v2280_v24 = vpop.f32.mrb[31].mxu1 }
 0x644   :  { %v1990_v40 = vmul.f32 -1.442695, %v1077_v41  ;;  %v2458_v23 = vld [vmem:[#allocation5 + $0x8] sm:$0xff]   ;;  %v1423_v24 = vpack.c.bf16 %v3105_v7, %v3061_v44 }
 0x645   :  { %2539 = vpow2.f32 %v1989_v22 }
 0x646   :  { %2541 = vpow2.f32 %v1990_v40  ;;  %v2460_v40 = vld [vmem:[#allocation5 + $0x18] sm:$0xff]  }
 0x64f   :  { %v2540_v42 = vpop.eup %2539 }
 0x650   :  { %v1074_v25 = vadd.f32 1.0, %v2540_v42  ;;  %v2542_v15 = vpop.eup %2541  ;;  %v2461_v42 = vld [vmem:[#allocation5 + $0x20] sm:$0xff]  }
 0x651   :  { %v1081_v27 = vadd.f32 1.0, %v2542_v15  ;;  %v2463_v15 = vld [vmem:[#allocation5 + $0x30] sm:$0xff]  }
 0x652   :  { %2543 = vrcp.f32 %v1074_v25  ;;  %v2462_v25 = vld [vmem:[#allocation5 + $0x28] sm:$0xff]  }
 0x653   :  { %2545 = vrcp.f32 %v1081_v27  ;;  %v2464_v27 = vld [vmem:[#allocation5 + $0x38] sm:$0xff]  }
 0x65c   :  { %v2544_v54 = vpop.eup %2543 }
 0x65d   :  { %v1085_v29 = vmul.f32 %v2544_v54, %v1084_v28  ;;  %v2546_v30 = vpop.eup %2545  ;;  %v1424_v28 = vpack.c.bf16 %v3193_v26, %v3149_v20 }
 0x65e   :  { %v1088_v31 = vsub.f32 1.0, %v2546_v30  ;;  %v1090_v34 = vmul.f32 %v2546_v30, %v3242_v4  ;;  %v2467_v30 = vld [vmem:[#allocation3 + $0x10] sm:$0xff]  }
 0x65f   :  { %v1086_v57 = vadd.f32 %v1085_v29, %v3037_v43  ;;  %v2622_v43 = vld [vmem:[%s3530_s2 + $0x50] ss:$12 sps:$4 sm:$0xff]   ;;  %v2465_v29 = vld [vmem:[#allocation3] sm:$0xff]  }
 0x661   :  { %2547 = vtanh.f32 %v1086_v57  ;;  %v2466_v57 = vld [vmem:[#allocation3 + $0x8] sm:$0xff]  }
 0x66b   :  { %v2548_v32 = vpop.eup %2547 }
 0x66c   :  { %v1089_v63 = vmul.f32 %v2548_v32, %v1088_v31  ;;  %v2468_v31 = vld [vmem:[#allocation3 + $0x18] sm:$0xff]   ;;  %v2469_v32 = vld [vmem:[#allocation3 + $0x20] sm:$0xff]  }
 0x66e   :  { %v3356_v8 = vadd.f32 %v1090_v34, %v1089_v63  ;;  %v2470_v34 = vld [vmem:[#allocation3 + $0x28] sm:$0xff]   ;;  %v2471_v63 = vld [vmem:[#allocation3 + $0x30] sm:$0xff]  }
 0x670   :  { %v1093_v46 = vpack.c.bf16 %v3356_v8, %v3356_v8  ;;  %v1425_v54 = vpack.c.bf16 %v3356_v8, %v3242_v4 }
 0x672   :  { %1127 = vmatmul.mubr.bf16.vlgmr.msra.gmra.mrb[40].mxu0 %v1093_v46  ;;  %2298 = vmatmul.mubr.bf16.vlgmr.msra.gmra.mrb[32].mxu1 %v1093_v46  ;;  %v2472_v46 = vld [vmem:[#allocation3 + $0x38] sm:$0xff]  }
 0x673   :  { %2302 = vmatpush3.bf16.msra.mxu1 %v3255_v16  ;;  %1200 = vmatpush1.bf16.msra.mxu0 %v3249_v51 }
 0x674   :  { %2303 = vmatprep.subr.bf16.mxu1 %v3548_v61  ;;  %1201 = vmatprep.subr.bf16.mxu0 %v3261_v6 }
 0x675   :  { %1231 = vmatprep.mubr.bf16.mxu0 %v3549_v52  ;;  %2317 = vmatprep.mubr.msk.bf16.mxu1 %vm2686_vm2, %v3548_v61  ;;  %v2623_v52 = vld [vmem:[%s3530_s2 + $0x68] ss:$12 sps:$4 sm:$0xff]  }
 0x677   :  { %2304 = vmatpush3.bf16.msra.mxu1 %v3277_v9  ;;  %1202 = vmatpush1.bf16.msra.mxu0 %v3271_v10 }
 0x678   :  { %2305 = vmatprep.subr.bf16.mxu1 %v3548_v61  ;;  %1203 = vmatprep.subr.bf16.mxu0 %v3283_v1 }
 0x67b   :  { %2306 = vmatpush3.bf16.msra.mxu1 %v3296_v59  ;;  %1204 = vmatpush1.bf16.msra.mxu0 %v3290_v14 }
 0x67c   :  { %2307 = vmatprep.subr.bf16.mxu1 %v3548_v61  ;;  %1205 = vmatprep.subr.bf16.mxu0 %v3302_v12 }
 0x67f   :  { %2308 = vmatpush3.bf16.msra.mxu1 %v2622_v43  ;;  %1206 = vmatpush1.bf16.msra.mxu0 %v3309_v19  ;;  %v2473_v43 = vld [vmem:[%s3536_s8] sm:$0xff]  }
 0x680   :  { %2309 = vmatprep.subr.bf16.mxu1 %v3548_v61  ;;  %1207 = vmatprep.subr.bf16.mxu0 %v3316_v3 }
 0x683   :  { %2310 = vmatpush3.bf16.msra.mxu1 %v2623_v52  ;;  %1208 = vmatpush1.bf16.msra.mxu0 %v3323_v58 }
 0x684   :  { %2311 = vmatprep.subr.bf16.mxu1 %v3548_v61  ;;  %1209 = vmatprep.subr.bf16.mxu0 %v3330_v33 }
 0x687   :  { %2312 = vmatpush3.bf16.msra.mxu1 %v2624_v56  ;;  %1210 = vmatpush1.bf16.msra.mxu0 %v3337_v21 }
 0x688   :  { %2313 = vmatprep.subr.bf16.mxu1 %v3548_v61  ;;  %1211 = vmatprep.subr.bf16.mxu0 %v2625_v45 }
 0x68b   :  { %2314 = vmatpush3.bf16.msra.mxu1 %v2626_v55  ;;  %1212 = vmatpush1.bf16.msra.mxu0 %v2627_v50 }
 0x68c   :  { %2315 = vmatprep.subr.bf16.mxu1 %v3548_v61  ;;  %1213 = vmatprep.subr.bf16.mxu0 %v2628_v60  ;;  %v3550_v60 = vld [vmem:[#allocation10_spill] sm:$0xff] }
 0x68f   :  { %2316 = vmatpush3.bf16.msra.mxu1 %v2629_v47  ;;  %1214 = vmatpush1.bf16.msra.mxu0 %v2630_v0 }
 0x690   :  { %2321 = vmatprep.subr.bf16.mxu0 %v3548_v61  ;;  %2341 = vmatprep.subr.bf16.mxu1 %v2457_v49 }
 0x745   :  { %v1128_v53 = vpop.f32.mrb[40].mxu0  ;;  %v1169_v13 = vpop.f32.mrb[32].mxu1 }
 0x746   :  { %v1175_v51 = vadd.f32 %v1128_v53, %v3047_v62  ;;  %v1130_v16 = vpop.f32.mrb[41].mxu0  ;;  %v2299_v6 = vpop.f32.mrb[33].mxu1  ;;  %v1189_v36 = vadd.f32 %v3058_v48, %v1169_v13 }
 0x747   :  { %v1182_v10 = vadd.f32 %v1130_v16, %v3049_v2  ;;  %v1132_v9 = vpop.f32.mrb[42].mxu0  ;;  %v1172_v1 = vpop.f32.mrb[34].mxu1 }
 0x748   :  { %v1991_v14 = vmul.f32 -1.442695, %v1175_v51  ;;  %v1133_v59 = vpop.f32.mrb[43].mxu0  ;;  %v2300_v12 = vpop.f32.mrb[35].mxu1 }
 0x749   :  { %v1992_v19 = vmul.f32 -1.442695, %v1182_v10  ;;  %v3551_v12 = vld [vmem:[#allocation9_spill] sm:$0xff] }
 0x74a   :  { %2549 = vpow2.f32 %v1991_v14 }
 0x74b   :  { %2551 = vpow2.f32 %v1992_v19 }
 0x754   :  { %v2550_v3 = vpop.eup %2549 }
 0x755   :  { %v1179_v58 = vadd.f32 1.0, %v2550_v3  ;;  %v2552_v33 = vpop.eup %2551 }
 0x756   :  { %v1186_v21 = vadd.f32 1.0, %v2552_v33 }
 0x757   :  { %2553 = vrcp.f32 %v1179_v58 }
 0x758   :  { %2555 = vrcp.f32 %v1186_v21 }
 0x761   :  { %v2554_v62 = vpop.eup %2553 }
 0x762   :  { %v1190_v35 = vmul.f32 %v2554_v62, %v1189_v36  ;;  %v2556_v39 = vpop.eup %2555 }
 0x763   :  { %v1193_v17 = vsub.f32 1.0, %v2556_v39  ;;  %v1195_v41 = vmul.f32 %v2556_v39, %v3356_v8 }
 0x764   :  { %v1191_v2 = vadd.f32 %v1190_v35, %v3029_v11  ;;  %v2459_v11 = vld [vmem:[#allocation5 + $0x10] sm:$0xff]  }
 0x766   :  { %2557 = vtanh.f32 %v1191_v2 }
 0x770   :  { %v2558_v37 = vpop.eup %2557 }
 0x771   :  { %v1194_v18 = vmul.f32 %v2558_v37, %v1193_v17 }
 0x773   :  { %v3417_v38 = vadd.f32 %v1195_v41, %v1194_v18  ;;  %v2474_v41 = vld [vmem:[%s3536_s8 + $0x8] sm:$0xff]   ;;  %v2475_v18 = vld [vmem:[%s3536_s8 + $0x10] sm:$0xff]  }
 0x775   :  { %v1198_v22 = vpack.c.bf16 %v3417_v38, %v3417_v38 }
 0x777   :  { %1232 = vmatmul.mubr.bf16.vlgmr.msra.gmra.mrb[44].mxu0 %v1198_v22  ;;  %2318 = vmatmul.mubr.bf16.vlgmr.msra.gmra.mrb[36].mxu1 %v1198_v22  ;;  %v2476_v22 = vld [vmem:[%s3536_s8 + $0x18] sm:$0xff]  }
 0x778   :  { %2342 = vmatpush3.bf16.msra.mxu1 %v2457_v49  ;;  %2357 = vmatprep.mubr.bf16.mxu1 %v1423_v24  ;;  %v2478_v24 = vld [vmem:[%s3536_s8 + $0x28] sm:$0xff]  }
 0x779   :  { %2343 = vmatprep.subr.bf16.mxu1 %v2458_v23  ;;  %2337 = vmatprep.mubr.msk.bf16.mxu0 %vm2686_vm2, %v3548_v61 }
 0x77a   :  { %2322 = vmatpush3.bf16.msra.mxu0 %v2465_v29 }
 0x77b   :  { %2323 = vmatprep.subr.bf16.mxu0 %v3548_v61 }
 0x77c   :  { %2344 = vmatpush3.bf16.msra.mxu1 %v2458_v23  ;;  %v2477_v23 = vld [vmem:[%s3536_s8 + $0x20] sm:$0xff]  }
 0x77d   :  { %2345 = vmatprep.subr.bf16.mxu1 %v2459_v11 }
 0x77e   :  { %2324 = vmatpush3.bf16.msra.mxu0 %v2466_v57 }
 0x77f   :  { %2325 = vmatprep.subr.bf16.mxu0 %v3548_v61 }
 0x780   :  { %2346 = vmatpush3.bf16.msra.mxu1 %v2459_v11  ;;  %v2479_v11 = vld [vmem:[%s3536_s8 + $0x30] sm:$0xff]  }
 0x781   :  { %2347 = vmatprep.subr.bf16.mxu1 %v2460_v40 }
 0x782   :  { %2326 = vmatpush3.bf16.msra.mxu0 %v2467_v30 }
 0x783   :  { %2327 = vmatprep.subr.bf16.mxu0 %v3548_v61 }
 0x784   :  { %2348 = vmatpush3.bf16.msra.mxu1 %v2460_v40  ;;  %v2480_v40 = vld [vmem:[%s3536_s8 + $0x38] sm:$0xff]  }
 0x785   :  { %2349 = vmatprep.subr.bf16.mxu1 %v2461_v42 }
 0x786   :  { %2328 = vmatpush3.bf16.msra.mxu0 %v2468_v31 }
 0x787   :  { %2329 = vmatprep.subr.bf16.mxu0 %v3548_v61 }
 0x788   :  { %2350 = vmatpush3.bf16.msra.mxu1 %v2461_v42  ;;  %v1995_v42 = vld [vmem:[%s3535_s7] ss:$0 sm:$0xff] }
 0x789   :  { %2351 = vmatprep.subr.bf16.mxu1 %v2462_v25 }
 0x78a   :  { %2330 = vmatpush3.bf16.msra.mxu0 %v2469_v32 }
 0x78b   :  { %2331 = vmatprep.subr.bf16.mxu0 %v3548_v61 }
 0x78c   :  { %2352 = vmatpush3.bf16.msra.mxu1 %v2462_v25 }
 0x78d   :  { %2353 = vmatprep.subr.bf16.mxu1 %v2463_v15 }
 0x78e   :  { %2332 = vmatpush3.bf16.msra.mxu0 %v2470_v34 }
 0x78f   :  { %2333 = vmatprep.subr.bf16.mxu0 %v3548_v61 }
 0x790   :  { %2354 = vmatpush3.bf16.msra.mxu1 %v2463_v15 }
 0x791   :  { %2355 = vmatprep.subr.bf16.mxu1 %v2464_v27 }
 0x792   :  { %2334 = vmatpush3.bf16.msra.mxu0 %v2471_v63 }
 0x793   :  { %2335 = vmatprep.subr.bf16.mxu0 %v3548_v61 }
 0x794   :  { %2356 = vmatpush3.bf16.msra.mxu1 %v2464_v27 }
 0x795   :  { %2389 = vmatprep.subr.bf16.mxu1 %v3548_v61 }
 0x796   :  { %2336 = vmatpush3.bf16.msra.mxu0 %v2472_v46 }
 0x797   :  { %2358 = vmatmul.mubr.bf16.vlgmr.msra.gmra.mrb[40].mxu1 %v1424_v28  ;;  %2365 = vmatprep.subr.bf16.mxu0 %v2473_v43 }
 0x798   :  { %2361 = vmatprep.mubr.bf16.mxu1 %v1425_v54 }
 0x84a   :  { %v1233_v52 = vpop.f32.mrb[44].mxu0  ;;  %v1274_v56 = vpop.f32.mrb[36].mxu1 }
 0x84b   :  { %v1280_v45 = vadd.f32 %v1233_v52, %v3051_v5  ;;  %v1235_v55 = vpop.f32.mrb[45].mxu0  ;;  %v2319_v50 = vpop.f32.mrb[37].mxu1  ;;  %v1294_v14 = vadd.f32 %v3058_v48, %v1274_v56 }
 0x84c   :  { %v1287_v47 = vadd.f32 %v1235_v55, %v3550_v60  ;;  %v1237_v0 = vpop.f32.mrb[46].mxu0  ;;  %v1277_v49 = vpop.f32.mrb[38].mxu1 }
 0x84d   :  { %v1993_v53 = vmul.f32 -1.442695, %v1280_v45  ;;  %v1238_v13 = vpop.f32.mrb[47].mxu0  ;;  %v2320_v51 = vpop.f32.mrb[39].mxu1 }
 0x84e   :  { %v1994_v16 = vmul.f32 -1.442695, %v1287_v47 }
 0x84f   :  { %2559 = vpow2.f32 %v1993_v53 }
 0x850   :  { %2561 = vpow2.f32 %v1994_v16 }
 0x859   :  { %v2560_v6 = vpop.eup %2559 }
 0x85a   :  { %v1284_v10 = vadd.f32 1.0, %v2560_v6  ;;  %v2562_v9 = vpop.eup %2561 }
 0x85b   :  { %v1291_v1 = vadd.f32 1.0, %v2562_v9  ;;  %v2481_v9 = vld [vmem:[%s3537_s9] sm:$0xff]  }
 0x85c   :  { %2563 = vrcp.f32 %v1284_v10  ;;  %2390 = vmatpush3.bf16.msra.mxu1 %v2481_v9 }
 0x85d   :  { %2565 = vrcp.f32 %v1291_v1  ;;  %2391 = vmatprep.subr.bf16.mxu1 %v3548_v61 }
 0x866   :  { %v2564_v5 = vpop.eup %2563 }
 0x867   :  { %v1295_v59 = vmul.f32 %v2564_v5, %v1294_v14  ;;  %v2566_v36 = vpop.eup %2565 }
 0x868   :  { %v1298_v62 = vsub.f32 1.0, %v2566_v36  ;;  %v1300_v39 = vmul.f32 %v2566_v36, %v3417_v38 }
 0x869   :  { %v1296_v19 = vadd.f32 %v1295_v59, %v3551_v12 }
 0x86a   :  { %v2359_v3 = vpop.f32.mrb[40].mxu1 }
 0x86b   :  { %2567 = vtanh.f32 %v1296_v19  ;;  %v1525_v58 = vpop.f32.mrb[41].mxu1 }
 0x86c   :  { %v2360_v33 = vpop.f32.mrb[42].mxu1 }
 0x86d   :  { %v1528_v21 = vpop.f32.mrb[43].mxu1 }
 0x875   :  { %v2568_v35 = vpop.eup %2567 }
 0x876   :  { %v1299_v2 = vmul.f32 %v2568_v35, %v1298_v62 }
 0x878   :  { %v3445_v17 = vadd.f32 %v1300_v39, %v1299_v2 }
 0x87a   :  { %v1311_v48 = vpack.c.bf16 %v3445_v17, %v3445_v17  ;;  %v1426_v37 = vpack.c.bf16 %v3445_v17, %v3417_v38 }
 0x87c   :  { %2338 = vmatmul.mubr.bf16.vlgmr.msra.gmra.mrb[48].mxu0 %v1311_v48  ;;  %2362 = vmatmul.mubr.bf16.gmra.mrb[44].mxu1 %v1426_v37 }
 0x87d   :  { %2366 = vmatpush3.bf16.msra.mxu0 %v2473_v43  ;;  %2405 = vmatprep.mubr.msk.bf16.mxu1 %vm2686_vm2, %v3548_v61 }
 0x87e   :  { %2367 = vmatprep.subr.bf16.mxu0 %v2474_v41 }
 0x881   :  { %2368 = vmatpush3.bf16.msra.mxu0 %v2474_v41 }
 0x882   :  { %2369 = vmatprep.subr.bf16.mxu0 %v2475_v18 }
 0x885   :  { %2370 = vmatpush3.bf16.msra.mxu0 %v2475_v18 }
 0x886   :  { %2371 = vmatprep.subr.bf16.mxu0 %v2476_v22 }
 0x889   :  { %2372 = vmatpush3.bf16.msra.mxu0 %v2476_v22 }
 0x88a   :  { %2373 = vmatprep.subr.bf16.mxu0 %v2477_v23 }
 0x88d   :  { %2374 = vmatpush3.bf16.msra.mxu0 %v2477_v23 }
 0x88e   :  { %2375 = vmatprep.subr.bf16.mxu0 %v2478_v24 }
 0x891   :  { %2376 = vmatpush3.bf16.msra.mxu0 %v2478_v24 }
 0x892   :  { %2377 = vmatprep.subr.bf16.mxu0 %v2479_v11 }
 0x895   :  { %2378 = vmatpush3.bf16.msra.mxu0 %v2479_v11 }
 0x896   :  { %2379 = vmatprep.subr.bf16.mxu0 %v2480_v40 }
 0x899   :  { %2380 = vmatpush3.bf16.msra.mxu0 %v2480_v40 }
 0x94f   :  { %v1417_v25 = vpop.f32.mrb[48].mxu0  ;;  %v2363_v15 = vpop.f32.mrb[44].mxu1 }
 0x950   :  { %v1418_v27 = vadd.f32 %v1995_v42, %v1417_v25  ;;  %v2339_v28 = vpop.f32.mrb[49].mxu0  ;;  %v1541_v54 = vpop.f32.mrb[45].mxu1 }
 0x951   :  { %v1420_v29 = vpop.f32.mrb[50].mxu0  ;;  %v2364_v57 = vpop.f32.mrb[46].mxu1 }
 0x952   :  { %v1550_v30 = vadd.f32 %v2363_v15, %v1418_v27  ;;  %v1542_v31 = vadd.f32 %v1541_v54, %v1418_v27  ;;  %v1553_v32 = vadd.f32 %v2364_v57, %v1418_v27  ;;  %v2340_v34 = vpop.f32.mrb[51].mxu0  ;;  %v1544_v63 = vpop.f32.mrb[47].mxu1  ;;  %v1526_v46 = vadd.f32 %v1525_v58, %v1418_v27 }
 0x953   :  { %v1545_v43 = vadd.f32 %v1544_v63, %v1418_v27  ;;  %v1529_v52 = vadd.f32 %v1528_v21, %v1418_v27  ;;  %v1534_v56 = vadd.f32 %v2359_v3, %v1418_v27  ;;  %v1537_v45 = vadd.f32 %v2360_v33, %v1418_v27 }
 0x954   :  { %2569 = vtanh.f32 %v1550_v30 }
 0x955   :  { %2571 = vtanh.f32 %v1542_v31  ;;  %v2482_v31 = vld [vmem:[%s3537_s9 + $0x8] sm:$0xff]  }
 0x956   :  { %2573 = vtanh.f32 %v1553_v32  ;;  %2392 = vmatpush3.bf16.msra.mxu1 %v2482_v31 }
 0x957   :  { %2575 = vtanh.f32 %v1545_v43  ;;  %2393 = vmatprep.subr.bf16.mxu1 %v3548_v61 }
 0x958   :  { %2577 = vtanh.f32 %v1526_v46 }
 0x959   :  { %2579 = vtanh.f32 %v1529_v52 }
 0x95a   :  { %2581 = vtanh.f32 %v1534_v56 }
 0x95b   :  { %2583 = vtanh.f32 %v1537_v45  ;;  %v2483_v45 = vld [vmem:[%s3537_s9 + $0x10] sm:$0xff]  }
 0x95c   :  { %2394 = vmatpush3.bf16.msra.mxu1 %v2483_v45 }
 0x95d   :  { %2395 = vmatprep.subr.bf16.mxu1 %v3548_v61 }
 0x95e   :  { %v2570_v55 = vpop.eup %2569 }
 0x95f   :  { %v2572_v50 = vpop.eup %2571 }
 0x960   :  { %v2574_v60 = vpop.eup %2573 }
 0x961   :  { %v2576_v47 = vpop.eup %2575  ;;  %v1567_v0 = vpack.c.bf16 %v2574_v60, %v2570_v55 }
 0x962   :  { %v2578_v49 = vpop.eup %2577  ;;  %v1566_v53 = vpack.c.bf16 %v2576_v47, %v2572_v50 }
 0x963   :  { %v2580_v13 = vpop.eup %2579 }
 0x964   :  { %v2582_v51 = vpop.eup %2581  ;;  %v1564_v16 = vpack.c.bf16 %v2580_v13, %v2578_v49  ;;  %v2485_v13 = vld [vmem:[%s3537_s9 + $0x20] sm:$0xff]  }
 0x965   :  { %v2584_v6 = vpop.eup %2583 }
 0x966   :  { %2381 = vmatprep.mubr.bf16.mxu0 %v1564_v16  ;;  %v1565_v10 = vpack.c.bf16 %v2584_v6, %v2582_v51  ;;  %v2486_v51 = vld [vmem:[%s3537_s9 + $0x28] sm:$0xff]   ;;  %v2487_v16 = vld [vmem:[%s3537_s9 + $0x30] sm:$0xff]   ;;  %v2488_v6 = vld [vmem:[%s3537_s9 + $0x38] sm:$0xff]  }
 0x968   :  { %2382 = vmatmul.mubr.bf16.vlgmr.msra.gmra.mrb[52].mxu0 %v1565_v10 }
 0x969   :  { %2385 = vmatprep.mubr.bf16.mxu0 %v1566_v53 }
 0x970   :  { %2386 = vmatmul.mubr.bf16.gmra.mrb[56].mxu0 %v1567_v0  ;;  %v2484_v0 = vld [vmem:[%s3537_s9 + $0x18] sm:$0xff]  }
 0x971   :  { %2396 = vmatpush3.bf16.msra.mxu1 %v2484_v0 }
 0x972   :  { %2397 = vmatprep.subr.bf16.mxu1 %v3548_v61 }
 0x975   :  { %2398 = vmatpush3.bf16.msra.mxu1 %v2485_v13 }
 0x976   :  { %2399 = vmatprep.subr.bf16.mxu1 %v3548_v61 }
 0x979   :  { %2400 = vmatpush3.bf16.msra.mxu1 %v2486_v51 }
 0x97a   :  { %2401 = vmatprep.subr.bf16.mxu1 %v3548_v61 }
 0x97d   :  { %2402 = vmatpush3.bf16.msra.mxu1 %v2487_v16 }
 0x97e   :  { %2403 = vmatprep.subr.bf16.mxu1 %v3548_v61 }
 0x981   :  { %2404 = vmatpush3.bf16.msra.mxu1 %v2488_v6 }
 0xa3b   :  { %v2383_v1 = vpop.f32.mrb[52].mxu0 }
 0xa3c   :  { %v1666_v14 = vpop.f32.mrb[53].mxu0 }
 0xa3d   :  { %v2384_v5 = vpop.f32.mrb[54].mxu0 }
 0xa3e   :  { %v1669_v59 = vpop.f32.mrb[55].mxu0 }
 0xa3f   :  { %v1697_v12 = vmax.f32 %v1666_v14, %v1669_v59 }
 0xa41   :  { %v1698_v19 = vmax.f32 %v1697_v12, %v2383_v1 }
 0xa43   :  { %v2387_v3 = vpop.f32.mrb[56].mxu0  ;;  %v1699_v58 = vmax.f32 %v1698_v19, %v2384_v5 }
 0xa44   :  { %v1682_v33 = vpop.f32.mrb[57].mxu0 }
 0xa45   :  { %v1700_v21 = vmax.f32 %v1699_v58, %v1682_v33  ;;  %v2388_v36 = vpop.f32.mrb[58].mxu0 }
 0xa46   :  { %v1685_v62 = vpop.f32.mrb[59].mxu0 }
 0xa47   :  { %v1701_v35 = vmax.f32 %v1700_v21, %v1685_v62 }
 0xa49   :  { %v1702_v2 = vmax.f32 %v1701_v35, %v2387_v3 }
 0xa4b   :  { %v1703_v39 = vmax.f32 %v1702_v2, %v2388_v36 }
 0xa4d   :  { %v1759_v48 = vsub.f32 %v1685_v62, %v1703_v39  ;;  %v1726_v37 = vsub.f32 %v2383_v1, %v1703_v39  ;;  %v1704_v41 = vsub.f32 %v1666_v14, %v1703_v39  ;;  %v1737_v18 = vsub.f32 %v2384_v5, %v1703_v39 }
 0xa4e   :  { %v1715_v22 = vsub.f32 %v1669_v59, %v1703_v39  ;;  %v1748_v23 = vsub.f32 %v1682_v33, %v1703_v39  ;;  %v1770_v24 = vsub.f32 %v2387_v3, %v1703_v39  ;;  %v1781_v11 = vsub.f32 %v2388_v36, %v1703_v39 }
 0xa4f   :  { %v1727_v40 = vmul.f32 1.442695, %v1726_v37  ;;  %v1705_v42 = vmul.f32 1.442695, %v1704_v41  ;;  %v1738_v15 = vmul.f32 1.442695, %v1737_v18 }
 0xa50   :  { %v1716_v25 = vmul.f32 1.442695, %v1715_v22  ;;  %v1749_v27 = vmul.f32 1.442695, %v1748_v23  ;;  %v1760_v28 = vmul.f32 1.442695, %v1759_v48 }
 0xa51   :  { %2585 = vpow2.f32 %v1727_v40  ;;  %v1771_v54 = vmul.f32 1.442695, %v1770_v24  ;;  %v1782_v30 = vmul.f32 1.442695, %v1781_v11 }
 0xa52   :  { %2587 = vpow2.f32 %v1705_v42 }
 0xa53   :  { %2589 = vpow2.f32 %v1716_v25 }
 0xa54   :  { %2591 = vpow2.f32 %v1738_v15 }
 0xa55   :  { %2593 = vpow2.f32 %v1749_v27  ;;  %v2031_v27 = vld [vmem:[%s3540_s12] ss:$0 sm:$0xff] }
 0xa56   :  { %2595 = vpow2.f32 %v1760_v28 }
 0xa57   :  { %2597 = vpow2.f32 %v1771_v54 }
 0xa58   :  { %2599 = vpow2.f32 %v1782_v30 }
 0xa5b   :  { %v2586_v29 = vpop.eup %2585 }
 0xa5c   :  { %v2588_v57 = vpop.eup %2587  ;;  %1732 = vperm.xlu1 %2419, %v2586_v29  }
 0xa5d   :  { %1710 = vperm.xlu0 %2418, %v2588_v57   ;;  %v2590_v32 = vpop.eup %2589 }
 0xa5e   :  { %v2592_v34 = vpop.eup %2591  ;;  %v1718_v63 = vadd.f32 %v2590_v32, %v2588_v57 }
 0xa5f   :  { %v2594_v43 = vpop.eup %2593 }
 0xa60   :  { %1743 = vperm.xlu1 %2419, %v2592_v34   ;;  %v1729_v46 = vadd.f32 %v2586_v29, %v1718_v63  ;;  %v2596_v55 = vpop.eup %2595 }
 0xa61   :  { %1721 = vperm.xlu0 %2418, %v2590_v32   ;;  %v2598_v50 = vpop.eup %2597 }
 0xa62   :  { %v1740_v52 = vadd.f32 %v2592_v34, %v1729_v46  ;;  %v2600_v49 = vpop.eup %2599 }
 0xa64   :  { %1754 = vperm.xlu1 %2419, %v2594_v43   ;;  %v1751_v56 = vadd.f32 %v2594_v43, %v1740_v52 }
 0xa66   :  { %v1762_v60 = vadd.f32 %v2596_v55, %v1751_v56 }
 0xa68   :  { %1776 = vperm.xlu1 %2419, %v2598_v50   ;;  %v1773_v47 = vadd.f32 %v2598_v50, %v1762_v60 }
 0xa6a   :  { %v1784_v53 = vadd.f32 %v2600_v49, %v1773_v47 }
 0xa6c   :  { %1794 = vperm.xlu0 %2418, %v1784_v53  }
 0xa70   :  { %1765 = vperm.xlu0 %2418, %v2596_v55  }
 0xa74   :  { %1787 = vperm.xlu0 %2418, %v2600_v49  }
 0xadb   :  { %v1733_v9 = vpop.permute.xlu1 %1732 }
 0xadc   :  { %v1711_v10 = vpop.permute.xlu0 %1710  ;;  %v1735_v19 = vmul.f32 %v1733_v9, %v3149_v20 }
 0xadd   :  { %v1713_v5 = vmul.f32 %v1711_v10, %v3061_v44 }
 0xadf   :  { %v1744_v59 = vpop.permute.xlu1 %1743 }
 0xae0   :  { %v1722_v1 = vpop.permute.xlu0 %1721  ;;  %v1746_v61 = vmul.f32 %v1744_v59, %v3193_v26 }
 0xae1   :  { %v1724_v14 = vmul.f32 %v1722_v1, %v3105_v7 }
 0xae3   :  { %v1725_v12 = vadd.f32 %v1724_v14, %v1713_v5  ;;  %v1755_v58 = vpop.permute.xlu1 %1754 }
 0xae4   :  { %v1757_v36 = vmul.f32 %v1755_v58, %v3242_v4  ;;  %v2020_v4 = vld [vmem:[%s3538_s10] ss:$0 sm:$0xff] }
 0xae5   :  { %v1736_v3 = vadd.f32 %v1735_v19, %v1725_v12 }
 0xae7   :  { %v1747_v21 = vadd.f32 %v1746_v61, %v1736_v3  ;;  %v1777_v62 = vpop.permute.xlu1 %1776 }
 0xae8   :  { %v1779_v44 = vmul.f32 %v1777_v62, %v3417_v38 }
 0xae9   :  { %v1758_v2 = vadd.f32 %v1757_v36, %v1747_v21 }
 0xaeb   :  { %v1795_v33 = vpop.permute.xlu0 %1794 }
 0xaec   :  { %2601 = vrcp.f32 %v1795_v33 }
 0xaef   :  { %v1766_v35 = vpop.permute.xlu0 %1765 }
 0xaf0   :  { %v1768_v7 = vmul.f32 %v1766_v35, %v3356_v8 }
 0xaf2   :  { %v1769_v39 = vadd.f32 %v1768_v7, %v1758_v2 }
 0xaf3   :  { %v1788_v48 = vpop.permute.xlu0 %1787 }
 0xaf4   :  { %v1780_v37 = vadd.f32 %v1779_v44, %v1769_v39  ;;  %v1790_v20 = vmul.f32 %v1788_v48, %v3445_v17  ;;  %v2030_v17 = vld [vmem:[%s3539_s11] ss:$0 sm:$0xff] }
 0xaf6   :  { %v2602_v41 = vpop.eup %2601  ;;  %v1791_v18 = vadd.f32 %v1790_v20, %v1780_v37 }
 0xaf8   :  { %v1798_v26 = vmul.f32 %v2602_v41, %v1791_v18 }
 0xafa   :  { %v1799_v22 = vpack.c.bf16 %v1798_v26, %v1798_v26 }
 0xafc   :  { %2406 = vmatmul.mubr.bf16.vlgmr.msra.gmra.mrb[48].mxu1 %v1799_v22 }
 0xbcf   :  { %v1905_v23 = vpop.f32.mrb[48].mxu1 }
 0xbd0   :  { %v1906_v24 = vadd.f32 %v2020_v4, %v1905_v23  ;;  %v2407_v11 = vpop.f32.mrb[49].mxu1 }
 0xbd1   :  { %v1908_v8 = vpop.f32.mrb[50].mxu1 }
 0xbd2   :  { %v2029_v40 = vmul.f32 -1.442695, %v1906_v24  ;;  %v2408_v38 = vpop.f32.mrb[51].mxu1 }
 0xbd4   :  { %2603 = vpow2.f32 %v2029_v40 }
 0xbde   :  { %v2604_v42 = vpop.eup %2603 }
 0xbdf   :  { %v1914_v25 = vadd.f32 1.0, %v2604_v42 }
 0xbe1   :  { %2605 = vrcp.f32 %v1914_v25 }
 0xbeb   :  { %v2606_v15 = vpop.eup %2605 }
 0xbec   :  { %v1924_v28 = vmul.f32 %v2606_v15, %v2030_v17 }
 0xbee   :  { %v1932_v54 = vadd.f32 %v2031_v27, %v1924_v28 }
 0xbf0   :  { %1934 = vst.msk [vmem:[%s3541_s13] sm:$0xff] %vm1933_vm3, %v1932_v54 }
 0xbf1   :  { %1939 = vsyncpa [#allocation4], 1 }
 0xbf2   :  { %1940 = vsyncpa [#allocation6], 1 }

</bundles_post_ra>
